<compile_context>
chip_gen: v7x
topology: tpu7x:2x2x1
jax: 0.10.0
libtpu: 0.0.40
codegen_flags: <defaults>
</compile_context>

<pallas_src>
import functools

import jax
import jax.numpy as jnp
from jax import lax
from jax.experimental import pallas as pl
from jax.experimental.pallas import tpu as pltpu


def _default_vmem_limit():
    """Scoped-VMEM limit with headroom, sized per TPU generation."""
    try:
        cap = pltpu.get_tpu_info().vmem_capacity_bytes
    except Exception:
        cap = 64 * 1024 * 1024          # conservative fallback (v7x-sized physical VMEM)
    return int(min(cap * 3 // 4, 100 * 1024 * 1024))


_VMEM_LIMIT = _default_vmem_limit()


def _round_up(x, m):
    return ((x + m - 1) // m) * m


def _pick_tile(dim, pref, granule):
    """Largest multiple of `granule` <= `pref` that divides `dim`; else the full dim
    (a full-extent block is always a legal BlockSpec)."""
    if dim <= pref:
        return dim
    t = (pref // granule) * granule
    while t >= granule:
        if dim % t == 0:
            return t
        t -= granule
    return dim


# ----------------------------------------------------------------------------
# Kernel 1/2: QKV projection with fully VMEM-resident grouped weights.
#   x: (tm, K) bf16     w: (3, K, N) bf16 (resident)     out: (3, tm, N) bf16
# ----------------------------------------------------------------------------
def _qkv_proj_kernel(x_ref, w_ref, o_ref):
    x = x_ref[...]
    for g in range(w_ref.shape[0]):          # static unroll over q/k/v planes
        o_ref[g] = jnp.dot(x, w_ref[g],
                           preferred_element_type=jnp.float32).astype(o_ref.dtype)


def qkv_projection(x2d, w_g, *, tm_pref=256):
    """x2d: (M, K), w_g: (G, K, N)  ->  (G, M, N).  Weights stay resident in VMEM;
    x is streamed exactly once; M is zero-padded up to the tile size."""
    M, K = x2d.shape
    G, K2, N = w_g.shape
    assert K == K2
    sub = 16 if x2d.dtype == jnp.bfloat16 else 8      # second-minor granule
    tm = min(tm_pref, _round_up(M, sub))
    m_pad = _round_up(M, tm)
    if m_pad != M:
        x2d = jnp.pad(x2d, ((0, m_pad - M), (0, 0)))  # zero rows project to zero

    out = pl.pallas_call(
        _qkv_proj_kernel,
        out_shape=jax.ShapeDtypeStruct((G, m_pad, N), x2d.dtype),
        grid=(m_pad // tm,),
        in_specs=[
            pl.BlockSpec((tm, K), lambda i: (i, 0)),          # stream x once
            pl.BlockSpec((G, K, N), lambda i: (0, 0, 0)),     # resident weights
        ],
        out_specs=pl.BlockSpec((G, tm, N), lambda i: (0, i, 0)),
        compiler_params=pltpu.CompilerParams(
            dimension_semantics=("parallel",),
            vmem_limit_bytes=_VMEM_LIMIT),
    )(x2d, w_g)
    if m_pad != M:
        out = out[:, :M, :]
    return out


# ----------------------------------------------------------------------------
# Kernel 2/2: flash-style MHA with the output projection fused into the finalize.
# ----------------------------------------------------------------------------
def _flash_mha_outproj_kernel(q_ref, k_ref, v_ref, wo_ref, o_ref,
                              q_sc, m_sc, l_sc, acc_sc, *, head_num, head_dim):
    # q_ref: (1,1,tq,E); k_ref/v_ref: (1,1,tk,E); wo_ref: (E,E) resident; o_ref: (1,tq,E)
    # q_sc: (H,tq,hd) input dtype; m_sc/l_sc: (H,tq,1) f32; acc_sc: (H,tq,hd) f32.
    ki = pl.program_id(2)
    H, hd = head_num, head_dim

    @pl.when(ki == 0)
    def _init():
        m_sc[...] = jnp.full_like(m_sc, -jnp.inf)
        l_sc[...] = jnp.zeros_like(l_sc)
        acc_sc[...] = jnp.zeros_like(acc_sc)
        # Hoist the per-head Q lane-slicing out of the KV loop (done once per q-tile).
        for h in range(H):
            q_sc[h] = q_ref[0, 0, :, h * hd:(h + 1) * hd]

    # TODO(synk): if profiles show vreg spills at large H/tk, switch this static
    # unroll to lax.fori_loop over heads to bound live ranges.
    for h in range(H):
        lo = h * hd
        q_h = q_sc[h]                         # (tq, hd) bf16, dk already folded in
        k_h = k_ref[0, 0, :, lo:lo + hd]      # (tk, hd)
        v_h = v_ref[0, 0, :, lo:lo + hd]      # (tk, hd)

        # logits: contract last dims directly -- no k_h.T materialization.
        s = lax.dot_general(q_h, k_h, (((1,), (1,)), ((), ())),
                            preferred_element_type=jnp.float32)      # (tq, tk) f32

        m_prev = m_sc[h]                                              # (tq, 1) f32
        m_new = jnp.maximum(m_prev, jnp.max(s, axis=-1, keepdims=True))
        alpha = jnp.exp(m_prev - m_new)
        p = jnp.exp(s - m_new)                                        # f32
        l_sc[h] = alpha * l_sc[h] + jnp.sum(p, axis=-1, keepdims=True)
        acc_sc[h] = alpha * acc_sc[h] + jnp.dot(
            p.astype(v_h.dtype), v_h, preferred_element_type=jnp.float32)
        m_sc[h] = m_new

    @pl.when(ki == pl.num_programs(2) - 1)
    def _finalize():
        # Fused output projection with resident W_out^T:
        #   out = concat_h(acc_h / l_h) @ W_out^T == sum_h (acc_h / l_h) @ W_out^T[h*hd:(h+1)*hd]
        # -> a single lane-dense (tq, E) store; the 'b h t d -> b t (h d)' permutation
        #    and the whole out_attention layer are absorbed here.
        tq = acc_sc.shape[1]
        E = wo_ref.shape[1]
        out = jnp.zeros((tq, E), jnp.float32)
        for h in range(H):
            o_h = acc_sc[h] / l_sc[h]                    # exact divide (once per q-tile)
            out = out + jnp.dot(o_h.astype(wo_ref.dtype),
                                wo_ref[h * hd:(h + 1) * hd, :],
                                preferred_element_type=jnp.float32)
        o_ref[0] = out.astype(o_ref.dtype)


def flash_mha_outproj(qkv3, w_out_t, head_num, *, out_dtype, tq_pref=256, tk_pref=512):
    """qkv3: (3, B, T, E) with per-plane (h d) feature layout; w_out_t: (E, E)
    (already transposed to (in, out)).  Returns the projected output (B, T, E)."""
    _, B, T, E = qkv3.shape
    hd = E // head_num
    tq = _pick_tile(T, tq_pref, 8)
    tk = _pick_tile(T, tk_pref, 8)

    kern = functools.partial(_flash_mha_outproj_kernel,
                             head_num=head_num, head_dim=hd)
    return pl.pallas_call(
        kern,
        out_shape=jax.ShapeDtypeStruct((B, T, E), out_dtype),
        grid=(B, T // tq, T // tk),                       # KV (reduction) axis last
        in_specs=[
            pl.BlockSpec((1, 1, tq, E), lambda b, qi, ki: (0, b, qi, 0)),   # Q plane
            pl.BlockSpec((1, 1, tk, E), lambda b, qi, ki: (1, b, ki, 0)),   # K plane
            pl.BlockSpec((1, 1, tk, E), lambda b, qi, ki: (2, b, ki, 0)),   # V plane
            pl.BlockSpec((E, E), lambda b, qi, ki: (0, 0)),                 # resident W_out^T
        ],
        out_specs=pl.BlockSpec((1, tq, E), lambda b, qi, ki: (b, qi, 0)),
        scratch_shapes=[
            pltpu.VMEM((head_num, tq, hd), qkv3.dtype),   # hoisted per-head Q
            pltpu.VMEM((head_num, tq, 1), jnp.float32),   # running max
            pltpu.VMEM((head_num, tq, 1), jnp.float32),   # running denom
            pltpu.VMEM((head_num, tq, hd), jnp.float32),  # output accumulator
        ],
        compiler_params=pltpu.CompilerParams(
            dimension_semantics=("parallel", "parallel", "arbitrary"),
            vmem_limit_bytes=_VMEM_LIMIT),
    )(qkv3, qkv3, qkv3, w_out_t)


# ----------------------------------------------------------------------------
# Full module forward
# ----------------------------------------------------------------------------
def _fold_qkv_weight(w_qkv, head_num, dk):
    """PyTorch qkv weight (3E, E) -> (3, E, E), with the einops permutation
    'b t (d k h) -> k b h t d' rewired so the projection output is laid out as
    (q|k|v, tokens, h*hd + d), and the dk multiplier folded into the Q slice."""
    _, E = w_qkv.shape
    hd = E // head_num
    w_t = w_qkv.T                                  # (E, 3E): col index = d*3H + k*H + h
    w_t = w_t.reshape(E, hd, 3, head_num)          # (in, d, k, h)
    w_g = jnp.transpose(w_t, (2, 0, 3, 1))         # (k, in, h, d)   (static-weight math)
    w_g = w_g.reshape(3, E, E)                     # (k, in, h*hd + d)
    return w_g.at[0].multiply(dk)                  # fold the (faithful) dk scale into Q


@functools.partial(jax.jit, static_argnames=("head_num", "compute_dtype"))
def multi_head_attention_forward(x, w_qkv, w_out, *, head_num,
                                 compute_dtype=jnp.bfloat16):
    """x: (B, T, E); w_qkv: (3E, E); w_out: (E, E)  (PyTorch (out, in) layouts)."""
    B, T, E = x.shape
    dk = (E // head_num) ** 1 / 2     # reproduce the PyTorch expression exactly (== hd/2)

    # Fold permutation + dk scale in f32, then cast operands to the MXU-friendly dtype.
    w_qkv_g = _fold_qkv_weight(w_qkv, head_num, dk).astype(compute_dtype)   # (3, E, E)
    w_out_t = w_out.T.astype(compute_dtype)                                 # (E, E) (in,out)
    xc = x.astype(compute_dtype)

    qkv3 = qkv_projection(xc.reshape(B * T, E), w_qkv_g)   # (3, B*T, E): q|k|v planes
    qkv3 = qkv3.reshape(3, B, T, E)                        # free reshape (leading dims)

    # Flash attention with the output projection fused into the finalize.
    return flash_mha_outproj(qkv3, w_out_t, head_num, out_dtype=x.dtype)    # (B, T, E)


# Pure-JAX f32 reference (mirrors the PyTorch code) for a correctness sanity check.
def _reference(x, w_qkv, w_out, head_num):
    B, T, E = x.shape
    hd = E // head_num
    dk = (E // head_num) ** 1 / 2
    qkv = x @ w_qkv.T
    qkv = qkv.reshape(B, T, hd, 3, head_num).transpose(3, 0, 4, 1, 2)
    q, k, v = qkv[0], qkv[1], qkv[2]
    energy = jnp.einsum('bhid,bhjd->bhij', q, k) * dk
    attn = jax.nn.softmax(energy, axis=-1)
    o = jnp.einsum('bhij,bhjd->bhid', attn, v)
    o = o.transpose(0, 2, 1, 3).reshape(B, T, E)
    return o @ w_out.T


if __name__ == "__main__":
    # Small shapes consistent with the module: batch=2, seq=8, embedding=32, heads=4.
    B, T, E, H = 2, 8, 32, 4

    key = jax.random.PRNGKey(0)
    kx, kq, ko = jax.random.split(key, 3)
    x = jax.random.normal(kx, (B, T, E), dtype=jnp.float32)
    # PyTorch Linear weight layout: (out_features, in_features).
    w_qkv = jax.random.normal(kq, (3 * E, E), dtype=jnp.float32) * 0.05
    w_out = jax.random.normal(ko, (E, E), dtype=jnp.float32) * 0.05

    out = multi_head_attention_forward(x, w_qkv, w_out, head_num=H)
    out = jax.block_until_ready(out)

    ref = _reference(x, w_qkv, w_out, H)
    assert out.shape == (B, T, E)
    err = float(jnp.max(jnp.abs(out - ref)))
    # Tolerance reflects the bf16 compute path (matmul operands / intermediates in
    # bf16); all accumulation and softmax statistics are f32 and the reciprocal is exact.
    assert jnp.allclose(out, ref, atol=2e-2, rtol=2e-2), err

    print("KERNEL_OK")
</pallas_src>

<mosaic_0001>
module attributes {stable_mosaic.version = 11 : i64} {
  func.func @_qkv_proj_kernel(%arg0: i32, %arg1: memref<16x32xbf16, #tpu.memory_space<vmem>>, %arg2: memref<3x32x32xbf16, #tpu.memory_space<vmem>>, %arg3: memref<3x16x32xbf16, #tpu.memory_space<vmem>>) attributes {dimension_semantics = [#tpu.dimension_semantics<parallel>], iteration_bounds = array<i64: 1>, scalar_prefetch = 0 : i64, scratch_operands = 0 : i64, tpu.core_type = #tpu.core_type<tc>, window_params = [{transform_indices = @transform_0, window_bounds = array<i64: 16, 32>}, {pipeline_mode = #tpu.pipeline_mode<synchronous>, transform_indices = @transform_1, window_bounds = array<i64: 3, 32, 32>}, {transform_indices = @transform_2, window_bounds = array<i64: 3, 16, 32>}]} {
    %c0 = arith.constant 0 : index
    %c0_0 = arith.constant 0 : index
    %0 = vector.load %arg1[%c0, %c0_0] : memref<16x32xbf16, #tpu.memory_space<vmem>>, vector<16x32xbf16>
    %c0_1 = arith.constant 0 : index
    %c0_2 = arith.constant 0 : index
    %c0_3 = arith.constant 0 : index
    %1 = vector.load %arg2[%c0_1, %c0_2, %c0_3] : memref<3x32x32xbf16, #tpu.memory_space<vmem>>, vector<1x32x32xbf16>
    %2 = vector.shape_cast %1 : vector<1x32x32xbf16> to vector<32x32xbf16>
    %cst = arith.constant dense<0.000000e+00> : vector<16x32xf32>
    %3 = tpu.matmul %0, %2, %cst {dimension_numbers = #tpu.dot_dimension_numbers<[1], [0], [0], [1], [0, 0, 1, 1], [], []>} : vector<16x32xbf16>, vector<32x32xbf16>, vector<16x32xf32> -> vector<16x32xf32>
    %4 = arith.truncf %3 : vector<16x32xf32> to vector<16x32xbf16>
    %c0_4 = arith.constant 0 : index
    %c0_5 = arith.constant 0 : index
    %c0_6 = arith.constant 0 : index
    %5 = vector.load %arg3[%c0_4, %c0_5, %c0_6] : memref<3x16x32xbf16, #tpu.memory_space<vmem>>, vector<1x16x32xbf16>
    %6 = vector.shape_cast %5 : vector<1x16x32xbf16> to vector<16x32xbf16>
    %7 = vector.shape_cast %4 : vector<16x32xbf16> to vector<1x16x32xbf16>
    tpu.vector_store %arg3[%c0_4, %c0_5, %c0_6], %7 {strides = array<i32>} : memref<3x16x32xbf16, #tpu.memory_space<vmem>>, vector<1x16x32xbf16>,
    %c1 = arith.constant 1 : index
    %c0_7 = arith.constant 0 : index
    %c0_8 = arith.constant 0 : index
    %8 = vector.load %arg2[%c1, %c0_7, %c0_8] : memref<3x32x32xbf16, #tpu.memory_space<vmem>>, vector<1x32x32xbf16>
    %9 = vector.shape_cast %8 : vector<1x32x32xbf16> to vector<32x32xbf16>
    %cst_9 = arith.constant dense<0.000000e+00> : vector<16x32xf32>
    %10 = tpu.matmul %0, %9, %cst_9 {dimension_numbers = #tpu.dot_dimension_numbers<[1], [0], [0], [1], [0, 0, 1, 1], [], []>} : vector<16x32xbf16>, vector<32x32xbf16>, vector<16x32xf32> -> vector<16x32xf32>
    %11 = arith.truncf %10 : vector<16x32xf32> to vector<16x32xbf16>
    %c1_10 = arith.constant 1 : index
    %c0_11 = arith.constant 0 : index
    %c0_12 = arith.constant 0 : index
    %12 = vector.load %arg3[%c1_10, %c0_11, %c0_12] : memref<3x16x32xbf16, #tpu.memory_space<vmem>>, vector<1x16x32xbf16>
    %13 = vector.shape_cast %12 : vector<1x16x32xbf16> to vector<16x32xbf16>
    %14 = vector.shape_cast %11 : vector<16x32xbf16> to vector<1x16x32xbf16>
    tpu.vector_store %arg3[%c1_10, %c0_11, %c0_12], %14 {strides = array<i32>} : memref<3x16x32xbf16, #tpu.memory_space<vmem>>, vector<1x16x32xbf16>,
    %c2 = arith.constant 2 : index
    %c0_13 = arith.constant 0 : index
    %c0_14 = arith.constant 0 : index
    %15 = vector.load %arg2[%c2, %c0_13, %c0_14] : memref<3x32x32xbf16, #tpu.memory_space<vmem>>, vector<1x32x32xbf16>
    %16 = vector.shape_cast %15 : vector<1x32x32xbf16> to vector<32x32xbf16>
    %cst_15 = arith.constant dense<0.000000e+00> : vector<16x32xf32>
    %17 = tpu.matmul %0, %16, %cst_15 {dimension_numbers = #tpu.dot_dimension_numbers<[1], [0], [0], [1], [0, 0, 1, 1], [], []>} : vector<16x32xbf16>, vector<32x32xbf16>, vector<16x32xf32> -> vector<16x32xf32>
    %18 = arith.truncf %17 : vector<16x32xf32> to vector<16x32xbf16>
    %c2_16 = arith.constant 2 : index
    %c0_17 = arith.constant 0 : index
    %c0_18 = arith.constant 0 : index
    %19 = vector.load %arg3[%c2_16, %c0_17, %c0_18] : memref<3x16x32xbf16, #tpu.memory_space<vmem>>, vector<1x16x32xbf16>
    %20 = vector.shape_cast %19 : vector<1x16x32xbf16> to vector<16x32xbf16>
    %21 = vector.shape_cast %18 : vector<16x32xbf16> to vector<1x16x32xbf16>
    tpu.vector_store %arg3[%c2_16, %c0_17, %c0_18], %21 {strides = array<i32>} : memref<3x16x32xbf16, #tpu.memory_space<vmem>>, vector<1x16x32xbf16>,
    return
  }
  func.func @transform_0(%arg0: i32) -> (i32, i32) {
    %c0_i32 = arith.constant 0 : i32
    %c0_i32_0 = arith.constant 0 : i32
    return %arg0, %c0_i32 : i32, i32
  }
  func.func @transform_1(%arg0: i32) -> (i32, i32, i32) {
    %c0_i32 = arith.constant 0 : i32
    %c0_i32_0 = arith.constant 0 : i32
    %c0_i32_1 = arith.constant 0 : i32
    %c0_i32_2 = arith.constant 0 : i32
    return %c0_i32, %c0_i32_0, %c0_i32_1 : i32, i32, i32
  }
  func.func @transform_2(%arg0: i32) -> (i32, i32, i32) {
    %c0_i32 = arith.constant 0 : i32
    %c0_i32_0 = arith.constant 0 : i32
    %c0_i32_1 = arith.constant 0 : i32
    return %c0_i32, %arg0, %c0_i32_0 : i32, i32, i32
  }
}

module attributes {stable_mosaic.version = 11 : i64} {
  func.func @_flash_mha_outproj_kernel(%arg0: i32, %arg1: i32, %arg2: i32, %arg3: memref<1x1x8x32xbf16, #tpu.memory_space<vmem>>, %arg4: memref<1x1x8x32xbf16, #tpu.memory_space<vmem>>, %arg5: memref<1x1x8x32xbf16, #tpu.memory_space<vmem>>, %arg6: memref<32x32xbf16, #tpu.memory_space<vmem>>, %arg7: memref<1x8x32xf32, #tpu.memory_space<vmem>>, %arg8: memref<4x8x8xbf16, #tpu.memory_space<vmem>>, %arg9: memref<4x8x1xf32, #tpu.memory_space<vmem>>, %arg10: memref<4x8x1xf32, #tpu.memory_space<vmem>>, %arg11: memref<4x8x8xf32, #tpu.memory_space<vmem>>) attributes {dimension_semantics = [#tpu.dimension_semantics<parallel>, #tpu.dimension_semantics<parallel>, #tpu.dimension_semantics<arbitrary>], iteration_bounds = array<i64: 2, 1, 1>, scalar_prefetch = 0 : i64, scratch_operands = 4 : i64, tpu.core_type = #tpu.core_type<tc>, window_params = [{transform_indices = @transform_0, window_bounds = array<i64: 1, 1, 8, 32>}, {transform_indices = @transform_1, window_bounds = array<i64: 1, 1, 8, 32>}, {transform_indices = @transform_2, window_bounds = array<i64: 1, 1, 8, 32>}, {pipeline_mode = #tpu.pipeline_mode<synchronous>, transform_indices = @transform_3, window_bounds = array<i64: 32, 32>}, {transform_indices = @transform_4, window_bounds = array<i64: 1, 8, 32>}]} {
    %c0_i32 = arith.constant 0 : i32
    %0 = arith.cmpi eq, %arg2, %c0_i32 : i32
    %1 = arith.extui %0 : i1 to i32
    %c0_i32_0 = arith.constant 0 : i32
    %2 = arith.cmpi ne, %1, %c0_i32_0 : i32
    scf.if %2 {
      %cst_127 = arith.constant 0xFF800000 : f32
      %162 = vector.broadcast %cst_127 : f32 to vector<4x8x1xf32>
      %c0_128 = arith.constant 0 : index
      %c0_129 = arith.constant 0 : index
      %c0_130 = arith.constant 0 : index
      %163 = vector.load %arg9[%c0_128, %c0_129, %c0_130] : memref<4x8x1xf32, #tpu.memory_space<vmem>>, vector<4x8x1xf32>
      tpu.vector_store %arg9[%c0_128, %c0_129, %c0_130], %162 {strides = array<i32>} : memref<4x8x1xf32, #tpu.memory_space<vmem>>, vector<4x8x1xf32>,
      %cst_131 = arith.constant 0.000000e+00 : f32
      %164 = vector.broadcast %cst_131 : f32 to vector<4x8x1xf32>
      %c0_132 = arith.constant 0 : index
      %c0_133 = arith.constant 0 : index
      %c0_134 = arith.constant 0 : index
      %165 = vector.load %arg10[%c0_132, %c0_133, %c0_134] : memref<4x8x1xf32, #tpu.memory_space<vmem>>, vector<4x8x1xf32>
      tpu.vector_store %arg10[%c0_132, %c0_133, %c0_134], %164 {strides = array<i32>} : memref<4x8x1xf32, #tpu.memory_space<vmem>>, vector<4x8x1xf32>,
      %cst_135 = arith.constant 0.000000e+00 : f32
      %166 = vector.broadcast %cst_135 : f32 to vector<4x8x8xf32>
      %c0_136 = arith.constant 0 : index
      %c0_137 = arith.constant 0 : index
      %c0_138 = arith.constant 0 : index
      %167 = vector.load %arg11[%c0_136, %c0_137, %c0_138] : memref<4x8x8xf32, #tpu.memory_space<vmem>>, vector<4x8x8xf32>
      tpu.vector_store %arg11[%c0_136, %c0_137, %c0_138], %166 {strides = array<i32>} : memref<4x8x8xf32, #tpu.memory_space<vmem>>, vector<4x8x8xf32>,
      %c0_139 = arith.constant 0 : index
      %c0_140 = arith.constant 0 : index
      %c0_141 = arith.constant 0 : index
      %c0_142 = arith.constant 0 : index
      %168 = vector.load %arg3[%c0_139, %c0_140, %c0_141, %c0_142] : memref<1x1x8x32xbf16, #tpu.memory_space<vmem>>, vector<1x1x8x8xbf16>
      %169 = vector.shape_cast %168 : vector<1x1x8x8xbf16> to vector<8x8xbf16>
      %c0_143 = arith.constant 0 : index
      %c0_144 = arith.constant 0 : index
      %c0_145 = arith.constant 0 : index
      %170 = vector.load %arg8[%c0_143, %c0_144, %c0_145] : memref<4x8x8xbf16, #tpu.memory_space<vmem>>, vector<1x8x8xbf16>
      %171 = vector.shape_cast %170 : vector<1x8x8xbf16> to vector<8x8xbf16>
      %172 = vector.shape_cast %169 : vector<8x8xbf16> to vector<1x8x8xbf16>
      tpu.vector_store %arg8[%c0_143, %c0_144, %c0_145], %172 {strides = array<i32>} : memref<4x8x8xbf16, #tpu.memory_space<vmem>>, vector<1x8x8xbf16>,
      %c0_146 = arith.constant 0 : index
      %c0_147 = arith.constant 0 : index
      %c0_148 = arith.constant 0 : index
      %c8_149 = arith.constant 8 : index
      %173 = vector.load %arg3[%c0_146, %c0_147, %c0_148, %c8_149] : memref<1x1x8x32xbf16, #tpu.memory_space<vmem>>, vector<1x1x8x8xbf16>
      %174 = vector.shape_cast %173 : vector<1x1x8x8xbf16> to vector<8x8xbf16>
      %c1_150 = arith.constant 1 : index
      %c0_151 = arith.constant 0 : index
      %c0_152 = arith.constant 0 : index
      %175 = vector.load %arg8[%c1_150, %c0_151, %c0_152] : memref<4x8x8xbf16, #tpu.memory_space<vmem>>, vector<1x8x8xbf16>
      %176 = vector.shape_cast %175 : vector<1x8x8xbf16> to vector<8x8xbf16>
      %177 = vector.shape_cast %174 : vector<8x8xbf16> to vector<1x8x8xbf16>
      tpu.vector_store %arg8[%c1_150, %c0_151, %c0_152], %177 {strides = array<i32>} : memref<4x8x8xbf16, #tpu.memory_space<vmem>>, vector<1x8x8xbf16>,
      %c0_153 = arith.constant 0 : index
      %c0_154 = arith.constant 0 : index
      %c0_155 = arith.constant 0 : index
      %c16_156 = arith.constant 16 : index
      %178 = vector.load %arg3[%c0_153, %c0_154, %c0_155, %c16_156] : memref<1x1x8x32xbf16, #tpu.memory_space<vmem>>, vector<1x1x8x8xbf16>
      %179 = vector.shape_cast %178 : vector<1x1x8x8xbf16> to vector<8x8xbf16>
      %c2_157 = arith.constant 2 : index
      %c0_158 = arith.constant 0 : index
      %c0_159 = arith.constant 0 : index
      %180 = vector.load %arg8[%c2_157, %c0_158, %c0_159] : memref<4x8x8xbf16, #tpu.memory_space<vmem>>, vector<1x8x8xbf16>
      %181 = vector.shape_cast %180 : vector<1x8x8xbf16> to vector<8x8xbf16>
      %182 = vector.shape_cast %179 : vector<8x8xbf16> to vector<1x8x8xbf16>
      tpu.vector_store %arg8[%c2_157, %c0_158, %c0_159], %182 {strides = array<i32>} : memref<4x8x8xbf16, #tpu.memory_space<vmem>>, vector<1x8x8xbf16>,
      %c0_160 = arith.constant 0 : index
      %c0_161 = arith.constant 0 : index
      %c0_162 = arith.constant 0 : index
      %c24_163 = arith.constant 24 : index
      %183 = vector.load %arg3[%c0_160, %c0_161, %c0_162, %c24_163] : memref<1x1x8x32xbf16, #tpu.memory_space<vmem>>, vector<1x1x8x8xbf16>
      %184 = vector.shape_cast %183 : vector<1x1x8x8xbf16> to vector<8x8xbf16>
      %c3_164 = arith.constant 3 : index
      %c0_165 = arith.constant 0 : index
      %c0_166 = arith.constant 0 : index
      %185 = vector.load %arg8[%c3_164, %c0_165, %c0_166] : memref<4x8x8xbf16, #tpu.memory_space<vmem>>, vector<1x8x8xbf16>
      %186 = vector.shape_cast %185 : vector<1x8x8xbf16> to vector<8x8xbf16>
      %187 = vector.shape_cast %184 : vector<8x8xbf16> to vector<1x8x8xbf16>
      tpu.vector_store %arg8[%c3_164, %c0_165, %c0_166], %187 {strides = array<i32>} : memref<4x8x8xbf16, #tpu.memory_space<vmem>>, vector<1x8x8xbf16>,
    } else {
    }
    %c0 = arith.constant 0 : index
    %c0_1 = arith.constant 0 : index
    %c0_2 = arith.constant 0 : index
    %3 = vector.load %arg8[%c0, %c0_1, %c0_2] : memref<4x8x8xbf16, #tpu.memory_space<vmem>>, vector<1x8x8xbf16>
    %4 = vector.shape_cast %3 : vector<1x8x8xbf16> to vector<8x8xbf16>
    %c0_3 = arith.constant 0 : index
    %c0_4 = arith.constant 0 : index
    %c0_5 = arith.constant 0 : index
    %c0_6 = arith.constant 0 : index
    %5 = vector.load %arg4[%c0_3, %c0_4, %c0_5, %c0_6] : memref<1x1x8x32xbf16, #tpu.memory_space<vmem>>, vector<1x1x8x8xbf16>
    %6 = vector.shape_cast %5 : vector<1x1x8x8xbf16> to vector<8x8xbf16>
    %c0_7 = arith.constant 0 : index
    %c0_8 = arith.constant 0 : index
    %c0_9 = arith.constant 0 : index
    %c0_10 = arith.constant 0 : index
    %7 = vector.load %arg5[%c0_7, %c0_8, %c0_9, %c0_10] : memref<1x1x8x32xbf16, #tpu.memory_space<vmem>>, vector<1x1x8x8xbf16>
    %8 = vector.shape_cast %7 : vector<1x1x8x8xbf16> to vector<8x8xbf16>
    %cst = arith.constant dense<0.000000e+00> : vector<8x8xf32>
    %9 = tpu.matmul %4, %6, %cst {dimension_numbers = #tpu.dot_dimension_numbers<[1], [1], [0], [0], [0, 0, 1, 0], [], []>} : vector<8x8xbf16>, vector<8x8xbf16>, vector<8x8xf32> -> vector<8x8xf32>
    %c0_11 = arith.constant 0 : index
    %c0_12 = arith.constant 0 : index
    %c0_13 = arith.constant 0 : index
    %10 = vector.load %arg9[%c0_11, %c0_12, %c0_13] : memref<4x8x1xf32, #tpu.memory_space<vmem>>, vector<1x8x1xf32>
    %11 = vector.shape_cast %10 : vector<1x8x1xf32> to vector<8x1xf32>
    %cst_14 = arith.constant dense<0xFF800000> : vector<8xf32>
    %12 = vector.multi_reduction <maximumf>, %9, %cst_14 [1] : vector<8x8xf32> to vector<8xf32>
    %13 = vector.shape_cast %12 : vector<8xf32> to vector<8x1xf32>
    %14 = arith.maximumf %11, %13 : vector<8x1xf32>
    %15 = arith.subf %11, %14 : vector<8x1xf32>
    %16 = math.exp %15 : vector<8x1xf32>
    %17 = vector.broadcast %14 : vector<8x1xf32> to vector<8x8xf32>
    %18 = arith.subf %9, %17 : vector<8x8xf32>
    %19 = math.exp %18 : vector<8x8xf32>
    %c0_15 = arith.constant 0 : index
    %c0_16 = arith.constant 0 : index
    %c0_17 = arith.constant 0 : index
    %20 = vector.load %arg10[%c0_15, %c0_16, %c0_17] : memref<4x8x1xf32, #tpu.memory_space<vmem>>, vector<1x8x1xf32>
    %21 = vector.shape_cast %20 : vector<1x8x1xf32> to vector<8x1xf32>
    %22 = arith.mulf %16, %21 : vector<8x1xf32>
    %cst_18 = arith.constant dense<0.000000e+00> : vector<8xf32>
    %23 = vector.multi_reduction <add>, %19, %cst_18 [1] : vector<8x8xf32> to vector<8xf32>
    %24 = vector.shape_cast %23 : vector<8xf32> to vector<8x1xf32>
    %25 = arith.addf %22, %24 : vector<8x1xf32>
    %c0_19 = arith.constant 0 : index
    %c0_20 = arith.constant 0 : index
    %c0_21 = arith.constant 0 : index
    %26 = vector.load %arg10[%c0_19, %c0_20, %c0_21] : memref<4x8x1xf32, #tpu.memory_space<vmem>>, vector<1x8x1xf32>
    %27 = vector.shape_cast %26 : vector<1x8x1xf32> to vector<8x1xf32>
    %28 = vector.shape_cast %25 : vector<8x1xf32> to vector<1x8x1xf32>
    tpu.vector_store %arg10[%c0_19, %c0_20, %c0_21], %28 {strides = array<i32>} : memref<4x8x1xf32, #tpu.memory_space<vmem>>, vector<1x8x1xf32>,
    %c0_22 = arith.constant 0 : index
    %c0_23 = arith.constant 0 : index
    %c0_24 = arith.constant 0 : index
    %29 = vector.load %arg11[%c0_22, %c0_23, %c0_24] : memref<4x8x8xf32, #tpu.memory_space<vmem>>, vector<1x8x8xf32>
    %30 = vector.shape_cast %29 : vector<1x8x8xf32> to vector<8x8xf32>
    %31 = vector.broadcast %16 : vector<8x1xf32> to vector<8x8xf32>
    %32 = arith.mulf %31, %30 : vector<8x8xf32>
    %33 = arith.truncf %19 : vector<8x8xf32> to vector<8x8xbf16>
    %cst_25 = arith.constant dense<0.000000e+00> : vector<8x8xf32>
    %34 = tpu.matmul %33, %8, %cst_25 {dimension_numbers = #tpu.dot_dimension_numbers<[1], [0], [0], [1], [0, 0, 1, 1], [], []>} : vector<8x8xbf16>, vector<8x8xbf16>, vector<8x8xf32> -> vector<8x8xf32>
    %35 = arith.addf %32, %34 : vector<8x8xf32>
    %c0_26 = arith.constant 0 : index
    %c0_27 = arith.constant 0 : index
    %c0_28 = arith.constant 0 : index
    %36 = vector.load %arg11[%c0_26, %c0_27, %c0_28] : memref<4x8x8xf32, #tpu.memory_space<vmem>>, vector<1x8x8xf32>
    %37 = vector.shape_cast %36 : vector<1x8x8xf32> to vector<8x8xf32>
    %38 = vector.shape_cast %35 : vector<8x8xf32> to vector<1x8x8xf32>
    tpu.vector_store %arg11[%c0_26, %c0_27, %c0_28], %38 {strides = array<i32>} : memref<4x8x8xf32, #tpu.memory_space<vmem>>, vector<1x8x8xf32>,
    %c0_29 = arith.constant 0 : index
    %c0_30 = arith.constant 0 : index
    %c0_31 = arith.constant 0 : index
    %39 = vector.load %arg9[%c0_29, %c0_30, %c0_31] : memref<4x8x1xf32, #tpu.memory_space<vmem>>, vector<1x8x1xf32>
    %40 = vector.shape_cast %39 : vector<1x8x1xf32> to vector<8x1xf32>
    %41 = vector.shape_cast %14 : vector<8x1xf32> to vector<1x8x1xf32>
    tpu.vector_store %arg9[%c0_29, %c0_30, %c0_31], %41 {strides = array<i32>} : memref<4x8x1xf32, #tpu.memory_space<vmem>>, vector<1x8x1xf32>,
    %c1 = arith.constant 1 : index
    %c0_32 = arith.constant 0 : index
    %c0_33 = arith.constant 0 : index
    %42 = vector.load %arg8[%c1, %c0_32, %c0_33] : memref<4x8x8xbf16, #tpu.memory_space<vmem>>, vector<1x8x8xbf16>
    %43 = vector.shape_cast %42 : vector<1x8x8xbf16> to vector<8x8xbf16>
    %c0_34 = arith.constant 0 : index
    %c0_35 = arith.constant 0 : index
    %c0_36 = arith.constant 0 : index
    %c8 = arith.constant 8 : index
    %44 = vector.load %arg4[%c0_34, %c0_35, %c0_36, %c8] : memref<1x1x8x32xbf16, #tpu.memory_space<vmem>>, vector<1x1x8x8xbf16>
    %45 = vector.shape_cast %44 : vector<1x1x8x8xbf16> to vector<8x8xbf16>
    %c0_37 = arith.constant 0 : index
    %c0_38 = arith.constant 0 : index
    %c0_39 = arith.constant 0 : index
    %c8_40 = arith.constant 8 : index
    %46 = vector.load %arg5[%c0_37, %c0_38, %c0_39, %c8_40] : memref<1x1x8x32xbf16, #tpu.memory_space<vmem>>, vector<1x1x8x8xbf16>
    %47 = vector.shape_cast %46 : vector<1x1x8x8xbf16> to vector<8x8xbf16>
    %cst_41 = arith.constant dense<0.000000e+00> : vector<8x8xf32>
    %48 = tpu.matmul %43, %45, %cst_41 {dimension_numbers = #tpu.dot_dimension_numbers<[1], [1], [0], [0], [0, 0, 1, 0], [], []>} : vector<8x8xbf16>, vector<8x8xbf16>, vector<8x8xf32> -> vector<8x8xf32>
    %c1_42 = arith.constant 1 : index
    %c0_43 = arith.constant 0 : index
    %c0_44 = arith.constant 0 : index
    %49 = vector.load %arg9[%c1_42, %c0_43, %c0_44] : memref<4x8x1xf32, #tpu.memory_space<vmem>>, vector<1x8x1xf32>
    %50 = vector.shape_cast %49 : vector<1x8x1xf32> to vector<8x1xf32>
    %cst_45 = arith.constant dense<0xFF800000> : vector<8xf32>
    %51 = vector.multi_reduction <maximumf>, %48, %cst_45 [1] : vector<8x8xf32> to vector<8xf32>
    %52 = vector.shape_cast %51 : vector<8xf32> to vector<8x1xf32>
    %53 = arith.maximumf %50, %52 : vector<8x1xf32>
    %54 = arith.subf %50, %53 : vector<8x1xf32>
    %55 = math.exp %54 : vector<8x1xf32>
    %56 = vector.broadcast %53 : vector<8x1xf32> to vector<8x8xf32>
    %57 = arith.subf %48, %56 : vector<8x8xf32>
    %58 = math.exp %57 : vector<8x8xf32>
    %c1_46 = arith.constant 1 : index
    %c0_47 = arith.constant 0 : index
    %c0_48 = arith.constant 0 : index
    %59 = vector.load %arg10[%c1_46, %c0_47, %c0_48] : memref<4x8x1xf32, #tpu.memory_space<vmem>>, vector<1x8x1xf32>
    %60 = vector.shape_cast %59 : vector<1x8x1xf32> to vector<8x1xf32>
    %61 = arith.mulf %55, %60 : vector<8x1xf32>
    %cst_49 = arith.constant dense<0.000000e+00> : vector<8xf32>
    %62 = vector.multi_reduction <add>, %58, %cst_49 [1] : vector<8x8xf32> to vector<8xf32>
    %63 = vector.shape_cast %62 : vector<8xf32> to vector<8x1xf32>
    %64 = arith.addf %61, %63 : vector<8x1xf32>
    %c1_50 = arith.constant 1 : index
    %c0_51 = arith.constant 0 : index
    %c0_52 = arith.constant 0 : index
    %65 = vector.load %arg10[%c1_50, %c0_51, %c0_52] : memref<4x8x1xf32, #tpu.memory_space<vmem>>, vector<1x8x1xf32>
    %66 = vector.shape_cast %65 : vector<1x8x1xf32> to vector<8x1xf32>
    %67 = vector.shape_cast %64 : vector<8x1xf32> to vector<1x8x1xf32>
    tpu.vector_store %arg10[%c1_50, %c0_51, %c0_52], %67 {strides = array<i32>} : memref<4x8x1xf32, #tpu.memory_space<vmem>>, vector<1x8x1xf32>,
    %c1_53 = arith.constant 1 : index
    %c0_54 = arith.constant 0 : index
    %c0_55 = arith.constant 0 : index
    %68 = vector.load %arg11[%c1_53, %c0_54, %c0_55] : memref<4x8x8xf32, #tpu.memory_space<vmem>>, vector<1x8x8xf32>
    %69 = vector.shape_cast %68 : vector<1x8x8xf32> to vector<8x8xf32>
    %70 = vector.broadcast %55 : vector<8x1xf32> to vector<8x8xf32>
    %71 = arith.mulf %70, %69 : vector<8x8xf32>
    %72 = arith.truncf %58 : vector<8x8xf32> to vector<8x8xbf16>
    %cst_56 = arith.constant dense<0.000000e+00> : vector<8x8xf32>
    %73 = tpu.matmul %72, %47, %cst_56 {dimension_numbers = #tpu.dot_dimension_numbers<[1], [0], [0], [1], [0, 0, 1, 1], [], []>} : vector<8x8xbf16>, vector<8x8xbf16>, vector<8x8xf32> -> vector<8x8xf32>
    %74 = arith.addf %71, %73 : vector<8x8xf32>
    %c1_57 = arith.constant 1 : index
    %c0_58 = arith.constant 0 : index
    %c0_59 = arith.constant 0 : index
    %75 = vector.load %arg11[%c1_57, %c0_58, %c0_59] : memref<4x8x8xf32, #tpu.memory_space<vmem>>, vector<1x8x8xf32>
    %76 = vector.shape_cast %75 : vector<1x8x8xf32> to vector<8x8xf32>
    %77 = vector.shape_cast %74 : vector<8x8xf32> to vector<1x8x8xf32>
    tpu.vector_store %arg11[%c1_57, %c0_58, %c0_59], %77 {strides = array<i32>} : memref<4x8x8xf32, #tpu.memory_space<vmem>>, vector<1x8x8xf32>,
    %c1_60 = arith.constant 1 : index
    %c0_61 = arith.constant 0 : index
    %c0_62 = arith.constant 0 : index
    %78 = vector.load %arg9[%c1_60, %c0_61, %c0_62] : memref<4x8x1xf32, #tpu.memory_space<vmem>>, vector<1x8x1xf32>
    %79 = vector.shape_cast %78 : vector<1x8x1xf32> to vector<8x1xf32>
    %80 = vector.shape_cast %53 : vector<8x1xf32> to vector<1x8x1xf32>
    tpu.vector_store %arg9[%c1_60, %c0_61, %c0_62], %80 {strides = array<i32>} : memref<4x8x1xf32, #tpu.memory_space<vmem>>, vector<1x8x1xf32>,
    %c2 = arith.constant 2 : index
    %c0_63 = arith.constant 0 : index
    %c0_64 = arith.constant 0 : index
    %81 = vector.load %arg8[%c2, %c0_63, %c0_64] : memref<4x8x8xbf16, #tpu.memory_space<vmem>>, vector<1x8x8xbf16>
    %82 = vector.shape_cast %81 : vector<1x8x8xbf16> to vector<8x8xbf16>
    %c0_65 = arith.constant 0 : index
    %c0_66 = arith.constant 0 : index
    %c0_67 = arith.constant 0 : index
    %c16 = arith.constant 16 : index
    %83 = vector.load %arg4[%c0_65, %c0_66, %c0_67, %c16] : memref<1x1x8x32xbf16, #tpu.memory_space<vmem>>, vector<1x1x8x8xbf16>
    %84 = vector.shape_cast %83 : vector<1x1x8x8xbf16> to vector<8x8xbf16>
    %c0_68 = arith.constant 0 : index
    %c0_69 = arith.constant 0 : index
    %c0_70 = arith.constant 0 : index
    %c16_71 = arith.constant 16 : index
    %85 = vector.load %arg5[%c0_68, %c0_69, %c0_70, %c16_71] : memref<1x1x8x32xbf16, #tpu.memory_space<vmem>>, vector<1x1x8x8xbf16>
    %86 = vector.shape_cast %85 : vector<1x1x8x8xbf16> to vector<8x8xbf16>
    %cst_72 = arith.constant dense<0.000000e+00> : vector<8x8xf32>
    %87 = tpu.matmul %82, %84, %cst_72 {dimension_numbers = #tpu.dot_dimension_numbers<[1], [1], [0], [0], [0, 0, 1, 0], [], []>} : vector<8x8xbf16>, vector<8x8xbf16>, vector<8x8xf32> -> vector<8x8xf32>
    %c2_73 = arith.constant 2 : index
    %c0_74 = arith.constant 0 : index
    %c0_75 = arith.constant 0 : index
    %88 = vector.load %arg9[%c2_73, %c0_74, %c0_75] : memref<4x8x1xf32, #tpu.memory_space<vmem>>, vector<1x8x1xf32>
    %89 = vector.shape_cast %88 : vector<1x8x1xf32> to vector<8x1xf32>
    %cst_76 = arith.constant dense<0xFF800000> : vector<8xf32>
    %90 = vector.multi_reduction <maximumf>, %87, %cst_76 [1] : vector<8x8xf32> to vector<8xf32>
    %91 = vector.shape_cast %90 : vector<8xf32> to vector<8x1xf32>
    %92 = arith.maximumf %89, %91 : vector<8x1xf32>
    %93 = arith.subf %89, %92 : vector<8x1xf32>
    %94 = math.exp %93 : vector<8x1xf32>
    %95 = vector.broadcast %92 : vector<8x1xf32> to vector<8x8xf32>
    %96 = arith.subf %87, %95 : vector<8x8xf32>
    %97 = math.exp %96 : vector<8x8xf32>
    %c2_77 = arith.constant 2 : index
    %c0_78 = arith.constant 0 : index
    %c0_79 = arith.constant 0 : index
    %98 = vector.load %arg10[%c2_77, %c0_78, %c0_79] : memref<4x8x1xf32, #tpu.memory_space<vmem>>, vector<1x8x1xf32>
    %99 = vector.shape_cast %98 : vector<1x8x1xf32> to vector<8x1xf32>
    %100 = arith.mulf %94, %99 : vector<8x1xf32>
    %cst_80 = arith.constant dense<0.000000e+00> : vector<8xf32>
    %101 = vector.multi_reduction <add>, %97, %cst_80 [1] : vector<8x8xf32> to vector<8xf32>
    %102 = vector.shape_cast %101 : vector<8xf32> to vector<8x1xf32>
    %103 = arith.addf %100, %102 : vector<8x1xf32>
    %c2_81 = arith.constant 2 : index
    %c0_82 = arith.constant 0 : index
    %c0_83 = arith.constant 0 : index
    %104 = vector.load %arg10[%c2_81, %c0_82, %c0_83] : memref<4x8x1xf32, #tpu.memory_space<vmem>>, vector<1x8x1xf32>
    %105 = vector.shape_cast %104 : vector<1x8x1xf32> to vector<8x1xf32>
    %106 = vector.shape_cast %103 : vector<8x1xf32> to vector<1x8x1xf32>
    tpu.vector_store %arg10[%c2_81, %c0_82, %c0_83], %106 {strides = array<i32>} : memref<4x8x1xf32, #tpu.memory_space<vmem>>, vector<1x8x1xf32>,
    %c2_84 = arith.constant 2 : index
    %c0_85 = arith.constant 0 : index
    %c0_86 = arith.constant 0 : index
    %107 = vector.load %arg11[%c2_84, %c0_85, %c0_86] : memref<4x8x8xf32, #tpu.memory_space<vmem>>, vector<1x8x8xf32>
    %108 = vector.shape_cast %107 : vector<1x8x8xf32> to vector<8x8xf32>
    %109 = vector.broadcast %94 : vector<8x1xf32> to vector<8x8xf32>
    %110 = arith.mulf %109, %108 : vector<8x8xf32>
    %111 = arith.truncf %97 : vector<8x8xf32> to vector<8x8xbf16>
    %cst_87 = arith.constant dense<0.000000e+00> : vector<8x8xf32>
    %112 = tpu.matmul %111, %86, %cst_87 {dimension_numbers = #tpu.dot_dimension_numbers<[1], [0], [0], [1], [0, 0, 1, 1], [], []>} : vector<8x8xbf16>, vector<8x8xbf16>, vector<8x8xf32> -> vector<8x8xf32>
    %113 = arith.addf %110, %112 : vector<8x8xf32>
    %c2_88 = arith.constant 2 : index
    %c0_89 = arith.constant 0 : index
    %c0_90 = arith.constant 0 : index
    %114 = vector.load %arg11[%c2_88, %c0_89, %c0_90] : memref<4x8x8xf32, #tpu.memory_space<vmem>>, vector<1x8x8xf32>
    %115 = vector.shape_cast %114 : vector<1x8x8xf32> to vector<8x8xf32>
    %116 = vector.shape_cast %113 : vector<8x8xf32> to vector<1x8x8xf32>
    tpu.vector_store %arg11[%c2_88, %c0_89, %c0_90], %116 {strides = array<i32>} : memref<4x8x8xf32, #tpu.memory_space<vmem>>, vector<1x8x8xf32>,
    %c2_91 = arith.constant 2 : index
    %c0_92 = arith.constant 0 : index
    %c0_93 = arith.constant 0 : index
    %117 = vector.load %arg9[%c2_91, %c0_92, %c0_93] : memref<4x8x1xf32, #tpu.memory_space<vmem>>, vector<1x8x1xf32>
    %118 = vector.shape_cast %117 : vector<1x8x1xf32> to vector<8x1xf32>
    %119 = vector.shape_cast %92 : vector<8x1xf32> to vector<1x8x1xf32>
    tpu.vector_store %arg9[%c2_91, %c0_92, %c0_93], %119 {strides = array<i32>} : memref<4x8x1xf32, #tpu.memory_space<vmem>>, vector<1x8x1xf32>,
    %c3 = arith.constant 3 : index
    %c0_94 = arith.constant 0 : index
    %c0_95 = arith.constant 0 : index
    %120 = vector.load %arg8[%c3, %c0_94, %c0_95] : memref<4x8x8xbf16, #tpu.memory_space<vmem>>, vector<1x8x8xbf16>
    %121 = vector.shape_cast %120 : vector<1x8x8xbf16> to vector<8x8xbf16>
    %c0_96 = arith.constant 0 : index
    %c0_97 = arith.constant 0 : index
    %c0_98 = arith.constant 0 : index
    %c24 = arith.constant 24 : index
    %122 = vector.load %arg4[%c0_96, %c0_97, %c0_98, %c24] : memref<1x1x8x32xbf16, #tpu.memory_space<vmem>>, vector<1x1x8x8xbf16>
    %123 = vector.shape_cast %122 : vector<1x1x8x8xbf16> to vector<8x8xbf16>
    %c0_99 = arith.constant 0 : index
    %c0_100 = arith.constant 0 : index
    %c0_101 = arith.constant 0 : index
    %c24_102 = arith.constant 24 : index
    %124 = vector.load %arg5[%c0_99, %c0_100, %c0_101, %c24_102] : memref<1x1x8x32xbf16, #tpu.memory_space<vmem>>, vector<1x1x8x8xbf16>
    %125 = vector.shape_cast %124 : vector<1x1x8x8xbf16> to vector<8x8xbf16>
    %cst_103 = arith.constant dense<0.000000e+00> : vector<8x8xf32>
    %126 = tpu.matmul %121, %123, %cst_103 {dimension_numbers = #tpu.dot_dimension_numbers<[1], [1], [0], [0], [0, 0, 1, 0], [], []>} : vector<8x8xbf16>, vector<8x8xbf16>, vector<8x8xf32> -> vector<8x8xf32>
    %c3_104 = arith.constant 3 : index
    %c0_105 = arith.constant 0 : index
    %c0_106 = arith.constant 0 : index
    %127 = vector.load %arg9[%c3_104, %c0_105, %c0_106] : memref<4x8x1xf32, #tpu.memory_space<vmem>>, vector<1x8x1xf32>
    %128 = vector.shape_cast %127 : vector<1x8x1xf32> to vector<8x1xf32>
    %cst_107 = arith.constant dense<0xFF800000> : vector<8xf32>
    %129 = vector.multi_reduction <maximumf>, %126, %cst_107 [1] : vector<8x8xf32> to vector<8xf32>
    %130 = vector.shape_cast %129 : vector<8xf32> to vector<8x1xf32>
    %131 = arith.maximumf %128, %130 : vector<8x1xf32>
    %132 = arith.subf %128, %131 : vector<8x1xf32>
    %133 = math.exp %132 : vector<8x1xf32>
    %134 = vector.broadcast %131 : vector<8x1xf32> to vector<8x8xf32>
    %135 = arith.subf %126, %134 : vector<8x8xf32>
    %136 = math.exp %135 : vector<8x8xf32>
    %c3_108 = arith.constant 3 : index
    %c0_109 = arith.constant 0 : index
    %c0_110 = arith.constant 0 : index
    %137 = vector.load %arg10[%c3_108, %c0_109, %c0_110] : memref<4x8x1xf32, #tpu.memory_space<vmem>>, vector<1x8x1xf32>
    %138 = vector.shape_cast %137 : vector<1x8x1xf32> to vector<8x1xf32>
    %139 = arith.mulf %133, %138 : vector<8x1xf32>
    %cst_111 = arith.constant dense<0.000000e+00> : vector<8xf32>
    %140 = vector.multi_reduction <add>, %136, %cst_111 [1] : vector<8x8xf32> to vector<8xf32>
    %141 = vector.shape_cast %140 : vector<8xf32> to vector<8x1xf32>
    %142 = arith.addf %139, %141 : vector<8x1xf32>
    %c3_112 = arith.constant 3 : index
    %c0_113 = arith.constant 0 : index
    %c0_114 = arith.constant 0 : index
    %143 = vector.load %arg10[%c3_112, %c0_113, %c0_114] : memref<4x8x1xf32, #tpu.memory_space<vmem>>, vector<1x8x1xf32>
    %144 = vector.shape_cast %143 : vector<1x8x1xf32> to vector<8x1xf32>
    %145 = vector.shape_cast %142 : vector<8x1xf32> to vector<1x8x1xf32>
    tpu.vector_store %arg10[%c3_112, %c0_113, %c0_114], %145 {strides = array<i32>} : memref<4x8x1xf32, #tpu.memory_space<vmem>>, vector<1x8x1xf32>,
    %c3_115 = arith.constant 3 : index
    %c0_116 = arith.constant 0 : index
    %c0_117 = arith.constant 0 : index
    %146 = vector.load %arg11[%c3_115, %c0_116, %c0_117] : memref<4x8x8xf32, #tpu.memory_space<vmem>>, vector<1x8x8xf32>
    %147 = vector.shape_cast %146 : vector<1x8x8xf32> to vector<8x8xf32>
    %148 = vector.broadcast %133 : vector<8x1xf32> to vector<8x8xf32>
    %149 = arith.mulf %148, %147 : vector<8x8xf32>
    %150 = arith.truncf %136 : vector<8x8xf32> to vector<8x8xbf16>
    %cst_118 = arith.constant dense<0.000000e+00> : vector<8x8xf32>
    %151 = tpu.matmul %150, %125, %cst_118 {dimension_numbers = #tpu.dot_dimension_numbers<[1], [0], [0], [1], [0, 0, 1, 1], [], []>} : vector<8x8xbf16>, vector<8x8xbf16>, vector<8x8xf32> -> vector<8x8xf32>
    %152 = arith.addf %149, %151 : vector<8x8xf32>
    %c3_119 = arith.constant 3 : index
    %c0_120 = arith.constant 0 : index
    %c0_121 = arith.constant 0 : index
    %153 = vector.load %arg11[%c3_119, %c0_120, %c0_121] : memref<4x8x8xf32, #tpu.memory_space<vmem>>, vector<1x8x8xf32>
    %154 = vector.shape_cast %153 : vector<1x8x8xf32> to vector<8x8xf32>
    %155 = vector.shape_cast %152 : vector<8x8xf32> to vector<1x8x8xf32>
    tpu.vector_store %arg11[%c3_119, %c0_120, %c0_121], %155 {strides = array<i32>} : memref<4x8x8xf32, #tpu.memory_space<vmem>>, vector<1x8x8xf32>,
    %c3_122 = arith.constant 3 : index
    %c0_123 = arith.constant 0 : index
    %c0_124 = arith.constant 0 : index
    %156 = vector.load %arg9[%c3_122, %c0_123, %c0_124] : memref<4x8x1xf32, #tpu.memory_space<vmem>>, vector<1x8x1xf32>
    %157 = vector.shape_cast %156 : vector<1x8x1xf32> to vector<8x1xf32>
    %158 = vector.shape_cast %131 : vector<8x1xf32> to vector<1x8x1xf32>
    tpu.vector_store %arg9[%c3_122, %c0_123, %c0_124], %158 {strides = array<i32>} : memref<4x8x1xf32, #tpu.memory_space<vmem>>, vector<1x8x1xf32>,
    %c0_i32_125 = arith.constant 0 : i32
    %159 = arith.cmpi eq, %arg2, %c0_i32_125 : i32
    %160 = arith.extui %159 : i1 to i32
    %c0_i32_126 = arith.constant 0 : i32
    %161 = arith.cmpi ne, %160, %c0_i32_126 : i32
    scf.if %161 {
      %cst_127 = arith.constant 0.000000e+00 : f32
      %162 = vector.broadcast %cst_127 : f32 to vector<8x32xf32>
      %c0_128 = arith.constant 0 : index
      %c0_129 = arith.constant 0 : index
      %c0_130 = arith.constant 0 : index
      %163 = vector.load %arg11[%c0_128, %c0_129, %c0_130] : memref<4x8x8xf32, #tpu.memory_space<vmem>>, vector<1x8x8xf32>
      %164 = vector.shape_cast %163 : vector<1x8x8xf32> to vector<8x8xf32>
      %c0_131 = arith.constant 0 : index
      %c0_132 = arith.constant 0 : index
      %c0_133 = arith.constant 0 : index
      %165 = vector.load %arg10[%c0_131, %c0_132, %c0_133] : memref<4x8x1xf32, #tpu.memory_space<vmem>>, vector<1x8x1xf32>
      %166 = vector.shape_cast %165 : vector<1x8x1xf32> to vector<8x1xf32>
      %167 = vector.broadcast %166 : vector<8x1xf32> to vector<8x8xf32>
      %168 = arith.divf %164, %167 : vector<8x8xf32>
      %169 = arith.truncf %168 : vector<8x8xf32> to vector<8x8xbf16>
      %c0_134 = arith.constant 0 : index
      %c0_135 = arith.constant 0 : index
      %170 = vector.load %arg6[%c0_134, %c0_135] : memref<32x32xbf16, #tpu.memory_space<vmem>>, vector<8x32xbf16>
      %cst_136 = arith.constant dense<0.000000e+00> : vector<8x32xf32>
      %171 = tpu.matmul %169, %170, %cst_136 {dimension_numbers = #tpu.dot_dimension_numbers<[1], [0], [0], [1], [0, 0, 1, 1], [], []>} : vector<8x8xbf16>, vector<8x32xbf16>, vector<8x32xf32> -> vector<8x32xf32>
      %172 = arith.addf %162, %171 : vector<8x32xf32>
      %c1_137 = arith.constant 1 : index
      %c0_138 = arith.constant 0 : index
      %c0_139 = arith.constant 0 : index
      %173 = vector.load %arg11[%c1_137, %c0_138, %c0_139] : memref<4x8x8xf32, #tpu.memory_space<vmem>>, vector<1x8x8xf32>
      %174 = vector.shape_cast %173 : vector<1x8x8xf32> to vector<8x8xf32>
      %c1_140 = arith.constant 1 : index
      %c0_141 = arith.constant 0 : index
      %c0_142 = arith.constant 0 : index
      %175 = vector.load %arg10[%c1_140, %c0_141, %c0_142] : memref<4x8x1xf32, #tpu.memory_space<vmem>>, vector<1x8x1xf32>
      %176 = vector.shape_cast %175 : vector<1x8x1xf32> to vector<8x1xf32>
      %177 = vector.broadcast %176 : vector<8x1xf32> to vector<8x8xf32>
      %178 = arith.divf %174, %177 : vector<8x8xf32>
      %179 = arith.truncf %178 : vector<8x8xf32> to vector<8x8xbf16>
      %c8_143 = arith.constant 8 : index
      %c0_144 = arith.constant 0 : index
      %180 = vector.load %arg6[%c8_143, %c0_144] : memref<32x32xbf16, #tpu.memory_space<vmem>>, vector<8x32xbf16>
      %cst_145 = arith.constant dense<0.000000e+00> : vector<8x32xf32>
      %181 = tpu.matmul %179, %180, %cst_145 {dimension_numbers = #tpu.dot_dimension_numbers<[1], [0], [0], [1], [0, 0, 1, 1], [], []>} : vector<8x8xbf16>, vector<8x32xbf16>, vector<8x32xf32> -> vector<8x32xf32>
      %182 = arith.addf %172, %181 : vector<8x32xf32>
      %c2_146 = arith.constant 2 : index
      %c0_147 = arith.constant 0 : index
      %c0_148 = arith.constant 0 : index
      %183 = vector.load %arg11[%c2_146, %c0_147, %c0_148] : memref<4x8x8xf32, #tpu.memory_space<vmem>>, vector<1x8x8xf32>
      %184 = vector.shape_cast %183 : vector<1x8x8xf32> to vector<8x8xf32>
      %c2_149 = arith.constant 2 : index
      %c0_150 = arith.constant 0 : index
      %c0_151 = arith.constant 0 : index
      %185 = vector.load %arg10[%c2_149, %c0_150, %c0_151] : memref<4x8x1xf32, #tpu.memory_space<vmem>>, vector<1x8x1xf32>
      %186 = vector.shape_cast %185 : vector<1x8x1xf32> to vector<8x1xf32>
      %187 = vector.broadcast %186 : vector<8x1xf32> to vector<8x8xf32>
      %188 = arith.divf %184, %187 : vector<8x8xf32>
      %189 = arith.truncf %188 : vector<8x8xf32> to vector<8x8xbf16>
      %c16_152 = arith.constant 16 : index
      %c0_153 = arith.constant 0 : index
      %190 = vector.load %arg6[%c16_152, %c0_153] : memref<32x32xbf16, #tpu.memory_space<vmem>>, vector<8x32xbf16>
      %cst_154 = arith.constant dense<0.000000e+00> : vector<8x32xf32>
      %191 = tpu.matmul %189, %190, %cst_154 {dimension_numbers = #tpu.dot_dimension_numbers<[1], [0], [0], [1], [0, 0, 1, 1], [], []>} : vector<8x8xbf16>, vector<8x32xbf16>, vector<8x32xf32> -> vector<8x32xf32>
      %192 = arith.addf %182, %191 : vector<8x32xf32>
      %c3_155 = arith.constant 3 : index
      %c0_156 = arith.constant 0 : index
      %c0_157 = arith.constant 0 : index
      %193 = vector.load %arg11[%c3_155, %c0_156, %c0_157] : memref<4x8x8xf32, #tpu.memory_space<vmem>>, vector<1x8x8xf32>
      %194 = vector.shape_cast %193 : vector<1x8x8xf32> to vector<8x8xf32>
      %c3_158 = arith.constant 3 : index
      %c0_159 = arith.constant 0 : index
      %c0_160 = arith.constant 0 : index
      %195 = vector.load %arg10[%c3_158, %c0_159, %c0_160] : memref<4x8x1xf32, #tpu.memory_space<vmem>>, vector<1x8x1xf32>
      %196 = vector.shape_cast %195 : vector<1x8x1xf32> to vector<8x1xf32>
      %197 = vector.broadcast %196 : vector<8x1xf32> to vector<8x8xf32>
      %198 = arith.divf %194, %197 : vector<8x8xf32>
      %199 = arith.truncf %198 : vector<8x8xf32> to vector<8x8xbf16>
      %c24_161 = arith.constant 24 : index
      %c0_162 = arith.constant 0 : index
      %200 = vector.load %arg6[%c24_161, %c0_162] : memref<32x32xbf16, #tpu.memory_space<vmem>>, vector<8x32xbf16>
      %cst_163 = arith.constant dense<0.000000e+00> : vector<8x32xf32>
      %201 = tpu.matmul %199, %200, %cst_163 {dimension_numbers = #tpu.dot_dimension_numbers<[1], [0], [0], [1], [0, 0, 1, 1], [], []>} : vector<8x8xbf16>, vector<8x32xbf16>, vector<8x32xf32> -> vector<8x32xf32>
      %202 = arith.addf %192, %201 : vector<8x32xf32>
      %c0_164 = arith.constant 0 : index
      %c0_165 = arith.constant 0 : index
      %c0_166 = arith.constant 0 : index
      %203 = vector.load %arg7[%c0_164, %c0_165, %c0_166] : memref<1x8x32xf32, #tpu.memory_space<vmem>>, vector<1x8x32xf32>
      %204 = vector.shape_cast %203 : vector<1x8x32xf32> to vector<8x32xf32>
      %205 = vector.shape_cast %202 : vector<8x32xf32> to vector<1x8x32xf32>
      tpu.vector_store %arg7[%c0_164, %c0_165, %c0_166], %205 {strides = array<i32>} : memref<1x8x32xf32, #tpu.memory_space<vmem>>, vector<1x8x32xf32>,
    } else {
    }
    return
  }
  func.func @transform_0(%arg0: i32, %arg1: i32, %arg2: i32) -> (i32, i32, i32, i32) {
    %c0_i32 = arith.constant 0 : i32
    %c0_i32_0 = arith.constant 0 : i32
    %c0_i32_1 = arith.constant 0 : i32
    return %c0_i32, %arg0, %arg1, %c0_i32_0 : i32, i32, i32, i32
  }
  func.func @transform_1(%arg0: i32, %arg1: i32, %arg2: i32) -> (i32, i32, i32, i32) {
    %c1_i32 = arith.constant 1 : i32
    %c0_i32 = arith.constant 0 : i32
    %c0_i32_0 = arith.constant 0 : i32
    return %c1_i32, %arg0, %arg2, %c0_i32 : i32, i32, i32, i32
  }
  func.func @transform_2(%arg0: i32, %arg1: i32, %arg2: i32) -> (i32, i32, i32, i32) {
    %c2_i32 = arith.constant 2 : i32
    %c0_i32 = arith.constant 0 : i32
    %c0_i32_0 = arith.constant 0 : i32
    return %c2_i32, %arg0, %arg2, %c0_i32 : i32, i32, i32, i32
  }
  func.func @transform_3(%arg0: i32, %arg1: i32, %arg2: i32) -> (i32, i32) {
    %c0_i32 = arith.constant 0 : i32
    %c0_i32_0 = arith.constant 0 : i32
    %c0_i32_1 = arith.constant 0 : i32
    return %c0_i32, %c0_i32_0 : i32, i32
  }
  func.func @transform_4(%arg0: i32, %arg1: i32, %arg2: i32) -> (i32, i32, i32) {
    %c0_i32 = arith.constant 0 : i32
    %c0_i32_0 = arith.constant 0 : i32
    return %arg0, %arg1, %c0_i32 : i32, i32, i32
  }
}

</mosaic_0001>

<bundles_post_ra>
// kernel: multi_head_attention_forward.2
= control target key start
LH: loop header
LB: loop body
LE: loop exit
PB: predicated region body
PF: predicated region fallthrough
CT: control target
= control target key end

     0   :  { %v309_v0 = vmov 0.0   ;;  %vm310_vm0 = vmmov 0   ;;  %vm35_vm1 = vcmask 261120   ;;  %vm88_vm2 = vcmask 257024   ;;  %s374_s1 = inlined_call_operand.vmem [shape: bf16[3,32,32], index: 1, kind: input, shape index: {}]   ;;  %s375_s0 = inlined_call_operand.vmem [shape: bf16[16,32], index: 0, kind: input, shape index: {}]   ;;  %s376_s2 = inlined_call_operand.vmem [shape: bf16[3,16,32], index: 2, kind: output, shape index: {}]  }
   0x1   :  { %276 = vmatprep.subr.bf16.mxu0 %v309_v0  ;;  %v302_v1 = vld [vmem:[%s374_s1] sm:$0xff]   ;;  %284 = vmatprep.subr.bf16.mxu1 %v309_v0  ;;  %v303_v2 = vld [vmem:[%s374_s1 + $0x8] sm:$0xff]   ;;  %v304_v3 = vld [vmem:[%s374_s1 + $0x10] sm:$0xff]  }
   0x2   :  { %280 = vmatprep.mubr.msk.bf16.mxu0 %vm310_vm0, %v309_v0  ;;  %288 = vmatprep.mubr.msk.bf16.mxu1 %vm310_vm0, %v309_v0  ;;  %v305_v4 = vld [vmem:[%s375_s0] sm:$0xff]   ;;  %v307_v5 = vld [vmem:[%s374_s1 + $0x18] sm:$0xff]   ;;  %v308_v7 = vld [vmem:[%s374_s1 + $0x28] sm:$0xff]  }
   0x3   :  { %277 = vmatpush3.bf16.msra.mxu0 %v302_v1  ;;  %285 = vmatpush3.bf16.msra.mxu1 %v304_v3  ;;  %v306_v6 = vld [vmem:[%s374_s1 + $0x20] sm:$0xff]  }
   0x4   :  { %278 = vmatprep.subr.bf16.mxu0 %v309_v0  ;;  %286 = vmatprep.subr.bf16.mxu1 %v309_v0 }
   0x7   :  { %279 = vmatpush3.bf16.msra.mxu0 %v303_v2  ;;  %287 = vmatpush3.bf16.msra.mxu1 %v307_v5 }
   0x8   :  { %292 = vmatprep.subr.bf16.mxu0 %v309_v0 }
   0xa   :  { %281 = vmatmul.mubr.msk.bf16.vlgmr.msra.gmra.mrb[0].mxu0 %vm35_vm1, %v305_v4  ;;  %289 = vmatmul.mubr.msk.bf16.vlgmr.msra.gmra.mrb[0].mxu1 %vm35_vm1, %v305_v4 }
   0xb   :  { %293 = vmatpush3.bf16.msra.mxu0 %v306_v6  ;;  %296 = vmatprep.mubr.msk.bf16.mxu0 %vm310_vm0, %v309_v0 }
   0xc   :  { %294 = vmatprep.subr.bf16.mxu0 %v309_v0 }
   0xf   :  { %295 = vmatpush3.bf16.msra.mxu0 %v308_v7 }
  0x12   :  { %297 = vmatmul.mubr.msk.bf16.vlgmr.msra.gmra.mrb[4].mxu0 %vm35_vm1, %v305_v4 }
  0xdd   :  { %v73_v8 = vpop.f32.mrb[0].mxu0  ;;  %v142_v12 = vpop.f32.mrb[0].mxu1 }
  0xde   :  { %v261_v9 = vpack.c.bf16 %v73_v8, %v73_v8  ;;  %v282_v10 = vpop.f32.mrb[1].mxu0  ;;  %v263_v15 = vpack.c.bf16 %v142_v12, %v142_v12  ;;  %v290_v16 = vpop.f32.mrb[1].mxu1 }
  0xdf   :  { %v76_v11 = vpop.f32.mrb[2].mxu0  ;;  %v145_v17 = vpop.f32.mrb[2].mxu1 }
  0xe0   :  { %89 = vst.msk [vmem:[%s376_s2] sm:$0xf] %vm88_vm2, %v261_v9  ;;  %v262_v13 = vpack.c.bf16 %v76_v11, %v76_v11  ;;  %v283_v14 = vpop.f32.mrb[3].mxu0  ;;  %248 = vst.msk [vmem:[%s376_s2 + $0x8] sm:$0xf] %vm88_vm2, %v263_v15  ;;  %v264_v18 = vpack.c.bf16 %v145_v17, %v145_v17  ;;  %v291_v19 = vpop.f32.mrb[3].mxu1 }
  0xe2   :  { %90 = vst.msk [vmem:[%s376_s2 + $0x4] sm:$0xf] %vm88_vm2, %v262_v13  ;;  %249 = vst.msk [vmem:[%s376_s2 + $0xc] sm:$0xf] %vm88_vm2, %v264_v18 }
  0xe5   :  { %v211_v20 = vpop.f32.mrb[4].mxu0 }
  0xe6   :  { %v265_v21 = vpack.c.bf16 %v211_v20, %v211_v20  ;;  %v298_v22 = vpop.f32.mrb[5].mxu0 }
  0xe7   :  { %v214_v23 = vpop.f32.mrb[6].mxu0 }
  0xe8   :  { %259 = vst.msk [vmem:[%s376_s2 + $0x10] sm:$0xf] %vm88_vm2, %v265_v21  ;;  %v266_v24 = vpack.c.bf16 %v214_v23, %v214_v23  ;;  %v299_v25 = vpop.f32.mrb[7].mxu0 }
  0xea   :  { %260 = vst.msk [vmem:[%s376_s2 + $0x14] sm:$0xf] %vm88_vm2, %v266_v24 }

// kernel: multi_head_attention_forward.3
= control target key start
LH: loop header
LB: loop body
LE: loop exit
PB: predicated region body
PF: predicated region fallthrough
CT: control target
= control target key end

     0   :  { %9 = vsyncpa [#allocation7], 0  ;;  %s1891_s0 = inlined_call_operand.vmem [shape: bf16[3,2,8,32], index: 0, kind: input, shape index: {}, may-alias: {0,1,2}]   ;;  %s1892_s1 = inlined_call_operand.vmem [shape: bf16[3,2,8,32], index: 1, kind: input, shape index: {}, may-alias: {0,1,2}]   ;;  %s1893_s2 = inlined_call_operand.vmem [shape: bf16[3,2,8,32], index: 2, kind: input, shape index: {}, may-alias: {0,1,2}]   ;;  %s1894_s3 = inlined_call_operand.vmem [shape: bf16[32,32], index: 3, kind: input, shape index: {}]   ;;  %s1895_s4 = inlined_call_operand.hbm [shape: f32[2,8,32], index: 4, kind: output, shape index: {}]  }
   0x1   :  { %11 = vsyncpa [#allocation7 + $0x1], 0  ;;  %s1605_s15 = smov 0   ;;  %s1607_s16 = smov 0  }
   0x2   :  { %s1609_s17 = smov 0   ;;  %s1611_s18 = smov 0  }
   0x3   :  { %s1613_s19 = smov 0   ;;  %s1615_s20 = smov 0  }
   0x4 LB: > { %s1251_s21 = sadd.s32 4294967295, %s1570_s20   ;;  %s1252_s22 = sadd.s32 4294967294, %s1570_s20   ;;  %s1570_s20 = sphi %s1615_s20, %s17_s20   ;;  %s1566_s19 = sphi %s1613_s19, %s1902_s19   ;;  %s1562_s18 = sphi %s1611_s18, %s1901_s18   ;;  %s1558_s17 = sphi %s1609_s17, %s1900_s17   ;;  %s1554_s16 = sphi %s1607_s16, %s1899_s16   ;;  %s1550_s15 = sphi %s1605_s15, %s1898_s15  }
   0x5   : > { %s36_s23 = sadd.s32 1, %s1566_s19  ;;  %s150_s24 = sadd.s32 1, %s1558_s17 }
   0x6   : > { %p38_p0 = scmp.ge.s32.totalorder %s36_s23, 2  ;;  %p160_p1 = scmp.ne.s32.totalorder %s1558_s17, %s1554_s16 }
   0x7   : > { %p161_p2 = scmp.eq.s32.totalorder %s1251_s21, 1  ;;  %p166_p3 = scmp.ne.s32.totalorder %s1554_s16, %s1550_s15 }
   0x8   : > { %s1904_s23 = smov (%p38_p0, %s36_s23), 0  ;;  %p167_p5 = scmp.eq.s32.totalorder %s1252_s22, 1 }
   0x9   : > { %p1645_p4 = por %p161_p2, %p160_p1  ;;  %s145_s26 = ssub.s32 %s1566_s19, %s1904_s23 }
   0xa   : > { %p1255_p6 = scmp.ge.s32.totalorder %s1570_s20, 1  ;;  %p148_p7 = scmp.eq.s32.totalorder %s145_s26, 0 }
   0xb   : > { %p1652_p8 = por %p167_p5, %p166_p3  ;;  %p220_p9 = scmp.lt.s32.totalorder %s1570_s20, 3 }
   0xc   : > { %s1658_s28 = scalar_select %p148_p7, %s1558_s17, %s150_s24  }
   0xd   : > { %p221_p10 = pnand %p1255_p6, %p220_p9 }
   0xe   : > { %p264_p11 = scmp.lt.s32.totalorder (!%p221_p10), %s1562_s18, 1  ;;  %vm301_vm0 = vcmask (!%p221_p10), 64512   ;;  %v1572_v0 = vmov (!%p221_p10), 0.0   ;;  %vm1573_vm1 = vmmov (!%p221_p10), 0   ;;  %vm307_vm2 = vcmask (!%p221_p10), 60416   ;;  %s1574_s11 = smov (!%p221_p10), 120  }
   0xf   : > { %224 = sbr.rel (%p221_p10) target bundleno = 1604 (0x644), region = 36  ;;  %1314 = vmatprep.subr.bf16.mxu0 (!%p221_p10), %v1572_v0  ;;  %302 = vst.msk [vmem:[#allocation5] sm:$0xff] (!%p221_p10), %vm301_vm0, %v1572_v0  ;;  %303 = vst.msk [vmem:[#allocation5 + $0x8] sm:$0xff] (!%p221_p10), %vm301_vm0, %v1572_v0  ;;  %1316 = vmatprep.mubr.msk.bf16.mxu0 (!%p221_p10), %vm1573_vm1, %v1572_v0  ;;  %s1575_s12 = smov (!%p221_p10), 112   ;;  %vm292_vm3 = vcmask (!%p221_p10), 7168   ;;  %v1576_v9 = vmov (!%p221_p10), -inf  }
  0x10   : > { %304 = vst.msk [vmem:[#allocation5 + $0x10] sm:$0xff] (!%p221_p10), %vm301_vm0, %v1572_v0  ;;  %305 = vst.msk [vmem:[#allocation5 + $0x18] sm:$0xff] (!%p221_p10), %vm301_vm0, %v1572_v0  ;;  %1338 = vmatprep.subr.bf16.mxu1 (!%p221_p10), %v1572_v0  ;;  %1340 = vmatprep.mubr.msk.bf16.mxu1 (!%p221_p10), %vm1573_vm1, %v1572_v0  ;;  %v1577_v21 = vmov (!%p221_p10), 0   ;;  %s1578_s13 = smov (!%p221_p10), 104   ;;  %vm415_vm4 = vcmask (!%p221_p10), 1043456   ;;  %s261_s9 = sand.u32 (!%p221_p10), 1, %s1554_s16  }
  0x11   : > { %293 = vst.msk [vmem:[#allocation3] sm:$0xff] (!%p221_p10), %vm292_vm3, %v1576_v9  ;;  %294 = vst.msk [vmem:[#allocation3 + $0x8] sm:$0xff] (!%p221_p10), %vm292_vm3, %v1576_v9  ;;  %1460 = vset.pattern.permute.xlu0 (!%p221_p10), %v1577_v21  ;;  %1461 = vset.pattern.permute.xlu1 (!%p221_p10), %v1577_v21  ;;  %vm1124_vm5 = vcmask (!%p221_p10), 261120   ;;  %s1127_s24 = scalar_lea.sflag (!%p221_p10), [#allocation7], %s261_s9 }
  0x12   : > { %295 = vst.msk [vmem:[#allocation3 + $0x10] sm:$0xff] (!%p221_p10), %vm292_vm3, %v1576_v9  ;;  %296 = vst.msk [vmem:[#allocation3 + $0x18] sm:$0xff] (!%p221_p10), %vm292_vm3, %v1576_v9 }
  0x13   : > { %297 = vst.msk [vmem:[#allocation4] sm:$0xff] (!%p221_p10), %vm292_vm3, %v1572_v0  ;;  %298 = vst.msk [vmem:[#allocation4 + $0x8] sm:$0xff] (!%p221_p10), %vm292_vm3, %v1572_v0 }
  0x14   : > { %299 = vst.msk [vmem:[#allocation4 + $0x10] sm:$0xff] (!%p221_p10), %vm292_vm3, %v1572_v0  ;;  %300 = vst.msk [vmem:[#allocation4 + $0x18] sm:$0xff] (!%p221_p10), %vm292_vm3, %v1572_v0 }
  0x16   : > { %s265_s29 = scalar_select %p264_p11, %s1562_s18, 1 }
  0x18   : > { %s1676_s30 = sshll.u32 %s265_s29, 2  ;;  %v380_v28 = vld [vmem:[#allocation3] sm:$0xff] }
  0x19   : > { %s1682_s7 = scalar_lea.vmem %s1891_s0, %s1676_s30  ;;  %s1688_s10 = scalar_lea.vmem %s1892_s1, %s1676_s30  ;;  %v1761_v48 = vld [vmem:[#allocation3 + $0x10] sm:$0xff] }
  0x1a   : > { %v306_v1 = vld [vmem:[%s1682_s7] sm:$0xf]  ;;  %v1260_v2 = vld [vmem:[%s1688_s10 + $0x8] sm:$0xf]  ;;  %s1734_s22 = scalar_lea.vmem %s1893_s2, %s1676_s30  ;;  %v396_v59 = vld [vmem:[#allocation4] sm:$0xff] }
  0x1b   : > { %v309_v3 = vld [vmem:[%s1682_s7] sm:$0xf]  ;;  %308 = vst.msk [vmem:[#allocation2] sm:$0xf] %vm307_vm2, %v306_v1  ;;  %v338_v4 = vsel %vm301_vm0, %v1260_v2, 0 }
  0x1c   : > { %311 = vrot.lane.b32.xlu1 %v309_v3, %s1574_s11  ;;  %v1462_v5 = vld [vmem:[%s1688_s10 + $0x8] ss:$0 sps:$4 sm:$0xff]   ;;  %1315 = vmatpush3.bf16.xpose.msra.mxu0 %v338_v4  ;;  %v316_v6 = vld [vmem:[%s1682_s7] sm:$0xf]  ;;  %v1261_v32 = vld [vmem:[%s1734_s22 + $0x10] sm:$0xf] }
  0x1d   : > { %1320 = vmatprep.subr.bf16.mxu0 %v1572_v0  ;;  %v1463_v8 = vld [vmem:[%s1688_s10 + $0x8] ss:$0 sps:$4 sm:$0xff]   ;;  %v323_v22 = vld [vmem:[%s1682_s7] sm:$0xf]  ;;  %v417_v33 = vsel %vm415_vm4, %v1261_v32, 0 }
  0x1e   : > { %v1464_v23 = vld [vmem:[%s1688_s10 + $0x8] ss:$0 sps:$4 sm:$0xff]   ;;  %v1465_v39 = vld [vmem:[%s1734_s22 + $0x10] ss:$0 sps:$4 sm:$0xff]   ;;  %s1256_s10 = sshll.u32 %s261_s9, 3 }
  0x20   : > { %469 = vrot.lane.b32.xlu1 %v1462_v5, %s1574_s11 }
  0x22   : > { %v330_v7 = vld [vmem:[#allocation2] sm:$0xf] }
  0x23   : > { %1317 = vmatmul.mubr.msk.bf16.vlgmr.msra.gmra.mrb[0].mxu0 %vm301_vm0, %v330_v7 }
  0x24   : > { %318 = vrot.lane.b32.xlu1 %v316_v6, %s1575_s12  ;;  %1322 = vmatprep.mubr.msk.bf16.mxu0 %vm1573_vm1, %v1572_v0 }
  0x25   : > { %1321 = vmatpush3.bf16.msra.mxu0 %v417_v33 }
  0x26   : > { %1326 = vmatprep.subr.bf16.mxu0 %v1572_v0 }
  0x28   : > { %612 = vrot.lane.b32.xlu1 %v1463_v8, %s1575_s12 }
  0x2c   : > { %325 = vrot.lane.b32.xlu1 %v323_v22, %s1578_s13 }
  0x30   : > { %755 = vrot.lane.b32.xlu1 %v1464_v23, %s1578_s13 }
  0x8e   : > { %v312_v10 = vpop.permute.xlu1 %311 }
  0x8f   : > { %315 = vst.msk [vmem:[#allocation2 + $0x4] sm:$0xf] %vm307_vm2, %v312_v10  ;;  %v518_v10 = vld [vmem:[#allocation3 + $0x8] sm:$0xff] }
  0x92   : > { %v470_v11 = vpop.permute.xlu1 %469 }
  0x93   : > { %v475_v44 = vsel %vm301_vm0, %v470_v11, 0 }
  0x96   : > { %v319_v12 = vpop.permute.xlu1 %318  ;;  %v463_v47 = vld [vmem:[#allocation2 + $0x4] sm:$0xf] }
  0x97   : > { %322 = vst.msk [vmem:[#allocation2 + $0x8] sm:$0xf] %vm307_vm2, %v319_v12 }
  0x9a   : > { %v613_v13 = vpop.permute.xlu1 %612 }
  0x9b   : > { %v618_v14 = vsel %vm301_vm0, %v613_v13, 0  ;;  %v804_v13 = vld [vmem:[#allocation3 + $0x18] sm:$0xff] }
  0x9c   : > { %1339 = vmatpush3.bf16.xpose.msra.mxu1 %v618_v14 }
  0x9d   : > { %1350 = vmatprep.subr.bf16.mxu1 %v1572_v0 }
  0x9e   : > { %v606_v15 = vld [vmem:[#allocation2 + $0x8] sm:$0xf]  ;;  %v326_v34 = vpop.permute.xlu1 %325 }
  0x9f   : > { %329 = vst.msk [vmem:[#allocation2 + $0xc] sm:$0xf] %vm307_vm2, %v326_v34 }
  0xa2   : > { %v756_v35 = vpop.permute.xlu1 %755 }
  0xa3   : > { %1341 = vmatmul.mubr.msk.bf16.vlgmr.msra.gmra.mrb[0].mxu1 %vm301_vm0, %v606_v15  ;;  %v761_v36 = vsel %vm301_vm0, %v756_v35, 0 }
  0xa4   : > { %1352 = vmatprep.mubr.msk.bf16.mxu1 %vm1573_vm1, %v1572_v0  ;;  %1351 = vmatpush3.bf16.xpose.msra.mxu1 %v761_v36 }
  0xa5   : > { %1362 = vmatprep.subr.bf16.mxu1 %v1572_v0 }
  0xa6   : > { %v749_v38 = vld [vmem:[#allocation2 + $0xc] sm:$0xf] }
  0xab   : > { %1353 = vmatmul.mubr.msk.bf16.vlgmr.msra.gmra.mrb[4].mxu1 %vm301_vm0, %v749_v38 }
  0xac   : > { %1364 = vmatprep.mubr.msk.bf16.mxu1 %vm1573_vm1, %v1572_v0 }
  0xf6   : > { %v374_v16 = vpop.f32.mrb[0].mxu0 }
  0xf7   : > { %v1318_v17 = vpop.f32.mrb[1].mxu0  ;;  %v381_v18 = vsel %vm301_vm0, %v374_v16, -inf }
  0xf8   : > { %382 = vmax.xlane.f32.xlu0 %v381_v18  ;;  %v377_v19 = vpop.f32.mrb[2].mxu0  ;;  %v1466_v18 = vld [vmem:[%s1734_s22 + $0x10] ss:$0 sps:$4 sm:$0xff]  }
  0xf9   : > { %v1319_v20 = vpop.f32.mrb[3].mxu0  ;;  %v1467_v19 = vld [vmem:[%s1734_s22 + $0x10] ss:$0 sps:$4 sm:$0xff]  }
 0x176   : > { %v1736_v24 = vpop.f32.mrb[0].mxu1 }
 0x177   : > { %v1342_v25 = vpop.f32.mrb[1].mxu1  ;;  %v662_v37 = vsel %vm301_vm0, %v1736_v24, -inf }
 0x178   : > { %v657_v26 = vpop.f32.mrb[2].mxu1 }
 0x179   : > { %v1343_v27 = vpop.f32.mrb[3].mxu1 }
 0x17e   : > { %v797_v53 = vpop.f32.mrb[4].mxu1 }
 0x17f   : > { %v1354_v54 = vpop.f32.mrb[5].mxu1  ;;  %v805_v9 = vsel %vm301_vm0, %v797_v53, -inf }
 0x180   : > { %v800_v55 = vpop.f32.mrb[6].mxu1  ;;  %v678_v54 = vld [vmem:[#allocation4 + $0x10] sm:$0xff] }
 0x181   : > { %v1355_v56 = vpop.f32.mrb[7].mxu1 }
 0x185   : > { %v383_v29 = vpop.xlane.xlu0 %382 }
 0x186   : > { %v384_v30 = vmax.f32 %v380_v28, %v383_v29 }
 0x188   : > { %v385_v31 = vsub.f32 %v380_v28, %v384_v30  ;;  %461 = vst.msk [vmem:[#allocation3] sm:$0xff] %vm292_vm3, %v384_v30  ;;  %390 = vperm.xlu0 %1460, %v384_v30  }
 0x18a   : > { %v386_v57 = vmul.f32 1.442695, %v385_v31 }
 0x1a7   : > { %663 = vmax.xlane.f32.xlu0 %v662_v37 }
 0x1bd   : > { %554 = vrot.lane.b32.xlu0 %v1465_v39, %s1574_s11  ;;  %s1287_s11 = sshll.u32 %s1562_s18, 7  ;;  %s1579_s18 = smov [#allocation6]  }
 0x1be   : > { %s1844_s22 = scalar_lea.hbm %s1895_s4, %s1287_s11  ;;  %s1496_s29 = sshll.u32 %s1579_s18, 4  ;;  %s1497_s29 = int_to_ptr.vmem [resolvable:$false] %s1496_s29 }
 0x1bf   : > { %s1498_s30 = scalar_lea.vmem %s1497_s29, 256 }
 0x207   : > { %v391_v40 = vpop.permute.xlu0 %390 }
 0x208   : > { %v393_v41 = vsub.f32 %v374_v16, %v391_v40 }
 0x20a   : > { %v394_v42 = vmul.f32 1.442695, %v393_v41 }
 0x20c   : > { %1468 = vpow2.f32 %v394_v42 }
 0x20d   : > { %1470 = vpow2.f32 %v386_v57 }
 0x216   : > { %v1469_v43 = vpop.eup %1468 }
 0x217   : > { %v398_v45 = vsel %vm301_vm0, %v1469_v43, 0.0  ;;  %v411_v46 = vpack.c.bf16 %v1469_v43, %v1469_v43  ;;  %v1770_v58 = vpop.eup %1470 }
 0x218   : > { %399 = vadd.xlane.f32.xlu0 %v398_v45  ;;  %v397_v60 = vmul.f32 %v1770_v58, %v396_v59 }
 0x219   : > { %1323 = vmatmul.mubr.msk.bf16.vlgmr.msra.gmra.mrb[4].mxu0 %vm301_vm0, %v411_v46 }
 0x21a   : > { %1327 = vmatpush3.bf16.xpose.msra.mxu0 %v475_v44  ;;  %1328 = vmatprep.mubr.msk.bf16.mxu0 %vm1573_vm1, %v1572_v0 }
 0x21b   : > { %1332 = vmatprep.subr.bf16.mxu0 %v1572_v0 }
 0x221   : > { %1329 = vmatmul.mubr.msk.bf16.vlgmr.msra.gmra.mrb[8].mxu0 %vm301_vm0, %v463_v47 }
 0x222   : > { %1334 = vmatprep.mubr.msk.bf16.mxu0 %vm1573_vm1, %v1572_v0 }
 0x234   : > { %v664_v49 = vpop.xlane.xlu0 %663 }
 0x235   : > { %v1764_v50 = vmax.f32 %v1761_v48, %v664_v49  ;;  %v535_v49 = vld [vmem:[#allocation4 + $0x8] sm:$0xff] }
 0x237   : > { %747 = vst.msk [vmem:[#allocation3 + $0x10] sm:$0xff] %vm292_vm3, %v1764_v50  ;;  %v666_v45 = vsub.f32 %v1761_v48, %v1764_v50 }
 0x238   : > { %v555_v51 = vpop.permute.xlu0 %554 }
 0x239   : > { %v560_v52 = vsel %vm415_vm4, %v555_v51, 0  ;;  %v667_v46 = vmul.f32 1.442695, %v666_v45 }
 0x23a   : > { %1333 = vmatpush3.bf16.msra.mxu0 %v560_v52 }
 0x23b   : > { %1344 = vmatprep.subr.bf16.mxu0 %v1572_v0 }
 0x2a5   : > { %v400_v61 = vpop.xlane.xlu0 %399 }
 0x2a6   : > { %v401_v62 = vadd.f32 %v400_v61, %v397_v60  ;;  %v821_v60 = vld [vmem:[#allocation4 + $0x18] sm:$0xff] }
 0x2a8   : > { %403 = vst.msk [vmem:[#allocation4] sm:$0xff] %vm292_vm3, %v401_v62 }
 0x2af   : > { %v895_v44 = vld [vmem:[#allocation4] sm:$0xff] }
 0x2ec   : > { %v1774_v63 = vpop.f32.mrb[4].mxu0 }
 0x2ed   : > { %v1324_v1 = vpop.f32.mrb[5].mxu0 }
 0x2ee   : > { %v456_v2 = vpop.f32.mrb[6].mxu0 }
 0x2ef   : > { %v1325_v3 = vpop.f32.mrb[7].mxu0 }
 0x2f4   : > { %v511_v4 = vpop.f32.mrb[8].mxu0 }
 0x2f5   : > { %v1330_v5 = vpop.f32.mrb[9].mxu0  ;;  %v519_v6 = vsel %vm301_vm0, %v511_v4, -inf }
 0x2f6   : > { %520 = vmax.xlane.f32.xlu1 %v519_v6  ;;  %v514_v7 = vpop.f32.mrb[10].mxu0  ;;  %v543_v6 = vld [vmem:[#allocation5 + $0x8] sm:$0xff] }
 0x2f7   : > { %v1331_v8 = vpop.f32.mrb[11].mxu0 }
 0x2fa   : > { %806 = vmax.xlane.f32.xlu1 %v805_v9 }
 0x383   : > { %v521_v11 = vpop.xlane.xlu1 %520 }
 0x384   : > { %v522_v12 = vmax.f32 %v518_v10, %v521_v11 }
 0x386   : > { %v523_v14 = vsub.f32 %v518_v10, %v522_v12  ;;  %604 = vst.msk [vmem:[#allocation3 + $0x8] sm:$0xff] %vm292_vm3, %v522_v12  ;;  %528 = vperm.xlu1 %1461, %v522_v12  }
 0x387   : > { %v807_v15 = vpop.xlane.xlu1 %806 }
 0x388   : > { %v808_v16 = vmax.f32 %v804_v13, %v807_v15  ;;  %v524_v41 = vmul.f32 1.442695, %v523_v14 }
 0x38a   : > { %671 = vperm.xlu1 %1461, %v1764_v50   ;;  %v809_v17 = vsub.f32 %v804_v13, %v808_v16  ;;  %890 = vst.msk [vmem:[#allocation3 + $0x18] sm:$0xff] %vm292_vm3, %v808_v16 }
 0x38c   : > { %v810_v47 = vmul.f32 1.442695, %v809_v17 }
 0x38e   : > { %814 = vperm.xlu1 %1461, %v808_v16  }
 0x392   : > { %697 = vrot.lane.b32.xlu1 %v1466_v18, %s1575_s12  ;;  %s263_s12 = scalar_lea.vmem [#allocation6], %s1256_s10 }
 0x396   : > { %840 = vrot.lane.b32.xlu1 %v1467_v19, %s1578_s13  ;;  %s1141_s13 = sshll.u32 %s263_s12, 4  ;;  %s1846_s13 = int_to_ptr.vmem [resolvable:$true] %s1141_s13 }
 0x397   : > { %s1492_s26 = scalar_lea.vmem %s1846_s13, 128  ;;  %p1499_p1 = scmp.lt.s32.totalorder %s1846_s13, %s1497_s29 }
 0x398   : > { %p1493_p12 = scmp.ne.s32.totalorder %s1846_s13, %s1492_s26  ;;  %p1500_p2 = scmp.lt.s32.totalorder %s1498_s30, %s1492_s26 }
 0x39a   : > { %p1494_p13 = pnand %p1493_p12, %p1645_p4  ;;  %p1501_p3 = por %p1500_p2, %p1499_p1 }
 0x39c   : > { %p1495_p0 = pneg %p1494_p13 }
 0x39e   : > { %p1502_p5 = pnand %p1501_p3, %p1495_p0 }
 0x405   : > { %v529_v20 = vpop.permute.xlu1 %528 }
 0x406   : > { %v531_v21 = vsub.f32 %v511_v4, %v529_v20  ;;  %v915_v4 = vld [vmem:[%s1894_s3 + $0x4] sm:$0xf] }
 0x407   : > { %v920_v5 = vsel %vm415_vm4, %v915_v4, 0 }
 0x408   : > { %v532_v22 = vmul.f32 1.442695, %v531_v21  ;;  %1363 = vmatpush3.bf16.msra.mxu1 %v920_v5 }
 0x409   : > { %v672_v23 = vpop.permute.xlu1 %671  ;;  %1368 = vmatprep.subr.bf16.mxu1 %v1572_v0 }
 0x40a   : > { %1472 = vpow2.f32 %v532_v22  ;;  %v674_v25 = vsub.f32 %v1736_v24, %v672_v23  ;;  %v404_v22 = vld [vmem:[#allocation5] sm:$0xff] }
 0x40c   : > { %v675_v26 = vmul.f32 1.442695, %v674_v25 }
 0x40d   : > { %v815_v27 = vpop.permute.xlu1 %814 }
 0x40e   : > { %1474 = vpow2.f32 %v675_v26  ;;  %v817_v28 = vsub.f32 %v797_v53, %v815_v27  ;;  %v686_v26 = vld [vmem:[#allocation5 + $0x10] sm:$0xff] }
 0x410   : > { %v818_v29 = vmul.f32 1.442695, %v817_v28 }
 0x411   : > { %v698_v30 = vpop.permute.xlu1 %697 }
 0x412   : > { %1476 = vpow2.f32 %v818_v29  ;;  %v703_v34 = vsel %vm415_vm4, %v698_v30, 0 }
 0x413   : > { %1478 = vpow2.f32 %v524_v41 }
 0x414   : > { %v1473_v31 = vpop.eup %1472  ;;  %1480 = vpow2.f32 %v667_v46 }
 0x415   : > { %v537_v32 = vsel %vm301_vm0, %v1473_v31, 0.0  ;;  %v550_v33 = vpack.c.bf16 %v1473_v31, %v1473_v31  ;;  %v841_v36 = vpop.permute.xlu1 %840  ;;  %1482 = vpow2.f32 %v810_v47  ;;  %v829_v31 = vld [vmem:[#allocation5 + $0x18] sm:$0xff] }
 0x416   : > { %538 = vadd.xlane.f32.xlu1 %v537_v32  ;;  %v846_v40 = vsel %vm415_vm4, %v841_v36, 0 }
 0x417   : > { %1335 = vmatmul.mubr.msk.bf16.vlgmr.msra.gmra.mrb[12].mxu0 %vm301_vm0, %v550_v33 }
 0x418   : > { %v1475_v35 = vpop.eup %1474  ;;  %1345 = vmatpush3.bf16.msra.mxu0 %v703_v34  ;;  %1346 = vmatprep.mubr.msk.bf16.mxu0 %vm1573_vm1, %v1572_v0 }
 0x419   : > { %v680_v24 = vsel %vm301_vm0, %v1475_v35, 0.0  ;;  %1356 = vmatprep.subr.bf16.mxu0 %v1572_v0  ;;  %v693_v39 = vpack.c.bf16 %v1475_v35, %v1475_v35  ;;  %v904_v35 = vld [vmem:[%s1894_s3] sm:$0xf] }
 0x41a   : > { %681 = vadd.xlane.f32.xlu0 %v680_v24 }
 0x41c   : > { %v1477_v37 = vpop.eup %1476 }
 0x41d   : > { %v823_v38 = vsel %vm301_vm0, %v1477_v37, 0.0  ;;  %v836_v42 = vpack.c.bf16 %v1477_v37, %v1477_v37  ;;  %v1479_v43 = vpop.eup %1478 }
 0x41e   : > { %824 = vadd.xlane.f32.xlu1 %v823_v38  ;;  %v536_v51 = vmul.f32 %v1479_v43, %v535_v49  ;;  %v1481_v52 = vpop.eup %1480  ;;  %v966_v38 = vsel %vm415_vm4, %v904_v35, 0 }
 0x41f   : > { %1347 = vmatmul.mubr.msk.bf16.vlgmr.msra.gmra.mrb[16].mxu0 %vm301_vm0, %v693_v39  ;;  %v679_v56 = vmul.f32 %v1481_v52, %v678_v54  ;;  %v1483_v57 = vpop.eup %1482 }
 0x420   : > { %1357 = vmatpush3.bf16.msra.mxu0 %v846_v40  ;;  %1358 = vmatprep.mubr.msk.bf16.mxu0 %vm1573_vm1, %v1572_v0  ;;  %v822_v48 = vmul.f32 %v1483_v57, %v821_v60 }
 0x427   : > { %1359 = vmatmul.mubr.msk.bf16.vlgmr.msra.gmra.mrb[20].mxu0 %vm301_vm0, %v836_v42 }
 0x430   : > { %546 = vperm.xlu0 %1460, %v1479_v43  }
 0x434   : > { %898 = vperm.xlu0 %1460, %v895_v44   ;;  %v1018_v44 = vld [vmem:[%s1894_s3 + $0x8] sm:$0xf] }
 0x435   : > { %v1023_v46 = vsel %vm415_vm4, %v1018_v44, 0 }
 0x4a3   : > { %v539_v53 = vpop.xlane.xlu1 %538 }
 0x4a4   : > { %v540_v55 = vadd.f32 %v539_v53, %v536_v51  ;;  %v1076_v53 = vld [vmem:[%s1894_s3 + $0xc] sm:$0xf] }
 0x4a6   : > { %541 = vst.msk [vmem:[#allocation4 + $0x8] sm:$0xff] %vm292_vm3, %v540_v55  ;;  %v1081_v55 = vsel %vm415_vm4, %v1076_v53, 0 }
 0x4a7   : > { %v682_v59 = vpop.xlane.xlu0 %681 }
 0x4a8   : > { %v683_v61 = vadd.f32 %v682_v59, %v679_v56 }
 0x4aa   : > { %684 = vst.msk [vmem:[#allocation4 + $0x10] sm:$0xff] %vm292_vm3, %v683_v61 }
 0x4ab   : > { %v825_v50 = vpop.xlane.xlu1 %824 }
 0x4ac   : > { %v826_v62 = vadd.f32 %v825_v50, %v822_v48 }
 0x4ad   : > { %v906_v1 = vld [vmem:[#allocation4 + $0x8] sm:$0xff] }
 0x4ae   : > { %827 = vst.msk [vmem:[#allocation4 + $0x18] sm:$0xff] %vm292_vm3, %v826_v62  ;;  %909 = vperm.xlu1 %1461, %v906_v1  }
 0x4af   : > { %v547_v7 = vpop.permute.xlu0 %546 }
 0x4b0   : > { %v549_v8 = vmul.f32 %v547_v7, %v543_v6 }
 0x4b1   : > { %v1009_v2 = vld [vmem:[#allocation4 + $0x10] sm:$0xff] }
 0x4b2   : > { %1012 = vperm.xlu0 %1460, %v1009_v2   ;;  %407 = vperm.xlu1 %1461, %v1770_v58  }
 0x4b3   : > { %v899_v28 = vpop.permute.xlu0 %898 }
 0x4b5   : > { %v1067_v3 = vld [vmem:[#allocation4 + $0x18] sm:$0xff] }
 0x4b6   : > { %689 = vperm.xlu1 %1461, %v1481_v52   ;;  %1070 = vperm.xlu0 %1460, %v1067_v3  }
 0x4ba   : > { %832 = vperm.xlu1 %1461, %v1483_v57  }
 0x4ea   : > { %v596_v9 = vpop.f32.mrb[12].mxu0 }
 0x4eb   : > { %v602_v10 = vadd.f32 %v596_v9, %v549_v8  ;;  %v1336_v11 = vpop.f32.mrb[13].mxu0 }
 0x4ec   : > { %v599_v58 = vpop.f32.mrb[14].mxu0 }
 0x4ed   : > { %603 = vst.msk [vmem:[#allocation5 + $0x8] sm:$0xff] %vm301_vm0, %v602_v10  ;;  %v1337_v12 = vpop.f32.mrb[15].mxu0 }
 0x4f2   : > { %v739_v13 = vpop.f32.mrb[16].mxu0 }
 0x4f3   : > { %v1348_v14 = vpop.f32.mrb[17].mxu0 }
 0x4f4   : > { %v742_v15 = vpop.f32.mrb[18].mxu0  ;;  %v905_v33 = vld [vmem:[#allocation5 + $0x8] sm:$0xff] }
 0x4f5   : > { %v1349_v16 = vpop.f32.mrb[19].mxu0 }
 0x4fa   : > { %v882_v17 = vpop.f32.mrb[20].mxu0 }
 0x4fb   : > { %v1360_v18 = vpop.f32.mrb[21].mxu0 }
 0x4fc   : > { %v885_v19 = vpop.f32.mrb[22].mxu0 }
 0x4fd   : > { %v1361_v20 = vpop.f32.mrb[23].mxu0 }
 0x52d   : > { %v910_v21 = vpop.permute.xlu1 %909 }
 0x52e   : > { %1484 = vrcp.f32 %v910_v21 }
 0x52f   : > { %1486 = vrcp.f32 %v899_v28 }
 0x531   : > { %v408_v23 = vpop.permute.xlu1 %407  ;;  %v1013_v41 = vpop.permute.xlu0 %1012 }
 0x532   : > { %v410_v25 = vmul.f32 %v408_v23, %v404_v22  ;;  %1488 = vrcp.f32 %v1013_v41 }
 0x534   : > { %v459_v27 = vadd.f32 %v1774_v63, %v410_v25 }
 0x535   : > { %v690_v29 = vpop.permute.xlu1 %689  ;;  %v1071_v49 = vpop.permute.xlu0 %1070 }
 0x536   : > { %460 = vst.msk [vmem:[#allocation5] sm:$0xff] %vm301_vm0, %v459_v27  ;;  %v692_v30 = vmul.f32 %v690_v29, %v686_v26  ;;  %1490 = vrcp.f32 %v1071_v49 }
 0x538   : > { %v1485_v32 = vpop.eup %1484  ;;  %v745_v34 = vadd.f32 %v739_v13, %v692_v30 }
 0x539   : > { %v913_v24 = vmul.f32 %v1485_v32, %v905_v33  ;;  %v833_v36 = vpop.permute.xlu1 %832  ;;  %v1487_v42 = vpop.eup %1486 }
 0x53a   : > { %746 = vst.msk [vmem:[#allocation5 + $0x10] sm:$0xff] %vm301_vm0, %v745_v34  ;;  %v835_v37 = vmul.f32 %v833_v36, %v829_v31 }
 0x53b   : > { %v914_v63 = vpack.c.bf16 %v913_v24, %v913_v24 }
 0x53c   : > { %v888_v39 = vadd.f32 %v882_v17, %v835_v37  ;;  %v1489_v51 = vpop.eup %1488 }
 0x53d   : > { %1365 = vmatmul.mubr.msk.bf16.vlgmr.msra.gmra.mrb[8].mxu1 %vm301_vm0, %v914_v63  ;;  %v894_v40 = vld [vmem:[#allocation5] sm:$0xff] }
 0x53e   : > { %889 = vst.msk [vmem:[#allocation5 + $0x18] sm:$0xff] %vm301_vm0, %v888_v39  ;;  %1369 = vmatpush3.bf16.msra.mxu1 %v966_v38  ;;  %1370 = vmatprep.mubr.msk.bf16.mxu1 %vm1573_vm1, %v1572_v0  ;;  %v902_v43 = vmul.f32 %v1487_v42, %v894_v40 }
 0x53f   : > { %1374 = vmatprep.subr.bf16.mxu1 %v1572_v0 }
 0x540   : > { %v903_v45 = vpack.c.bf16 %v902_v43, %v902_v43  ;;  %v1491_v57 = vpop.eup %1490 }
 0x541   : > { %v1008_v47 = vld [vmem:[#allocation5 + $0x10] sm:$0xff] }
 0x542   : > { %v1016_v52 = vmul.f32 %v1489_v51, %v1008_v47 }
 0x544   : > { %v1017_v54 = vpack.c.bf16 %v1016_v52, %v1016_v52 }
 0x545   : > { %v1066_v56 = vld [vmem:[#allocation5 + $0x18] sm:$0xff] }
 0x546   : > { %v1074_v59 = vmul.f32 %v1491_v57, %v1066_v56 }
 0x548   : > { %v1075_v60 = vpack.c.bf16 %v1074_v59, %v1074_v59 }
 0x549   : > { %1371 = vmatmul.mubr.msk.bf16.vlgmr.msra.gmra.mrb[8].mxu1 %vm301_vm0, %v903_v45 }
 0x54a   : > { %1375 = vmatpush3.bf16.msra.mxu1 %v1023_v46  ;;  %1376 = vmatprep.mubr.msk.bf16.mxu1 %vm1573_vm1, %v1572_v0 }
 0x54b   : > { %1380 = vmatprep.subr.bf16.mxu1 %v1572_v0 }
 0x555   : > { %1377 = vmatmul.mubr.msk.bf16.vlgmr.msra.gmra.mrb[8].mxu1 %vm301_vm0, %v1017_v54 }
 0x556   : > { %1381 = vmatpush3.bf16.msra.mxu1 %v1081_v55  ;;  %1382 = vmatprep.mubr.msk.bf16.mxu1 %vm1573_vm1, %v1572_v0 }
 0x561   : > { %1383 = vmatmul.mubr.msk.bf16.vlgmr.msra.gmra.mrb[8].mxu1 %vm301_vm0, %v1075_v60 }
 0x634   : > { %v1117_v0 = vpop.f32.mrb[8].mxu1 }
 0x635   : > { %1125 = vst.msk [vmem:[%s263_s12] sm:$0xff] %vm1124_vm5, %v1117_v0  ;;  %v1384_v61 = vpop.f32.mrb[9].mxu1 }
 0x636   : > { %v1120_v48 = vpop.f32.mrb[10].mxu1 }
 0x637   : > { %1505 = shalt.err (!%p1502_p5)
}
 0x638   : > { %s1506_s5 = scalar_lea.hbm %s1844_s22, 128  ;;  %s1510_s8 = scalar_lea.hbm %s1895_s4, 256 }
 0x639   : > { %p1507_p6 = scmp.ne.s32.totalorder %s1844_s22, %s1506_s5  ;;  %p1511_p10 = scmp.lt.u32.totalorder %s1844_s22, %s1895_s4 }
 0x63a   : > { %p1512_p11 = scmp.lt.u32.totalorder %s1510_s8, %s1506_s5  ;;  %p1514_p13 = scmp.lt.u32.totalorder %s1506_s5, %s1844_s22 }
 0x63b   : > { %p1508_p7 = pnand %p1507_p6, %p1645_p4 }
 0x63c   : > { %p1513_p12 = por %p1512_p11, %p1511_p10 }
 0x63d   : > { %p1509_p9 = pneg %p1508_p7 }
 0x63e   : > { %p1515_p0 = por %p1514_p13, %p1513_p12 }
 0x640   : > { %p1516_p1 = pnand %p1515_p0, %p1509_p9 }
 0x642   : > { %1519 = shalt.err (!%p1516_p1)
}
 0x643   : > { %1398 = dma.vmem_to_hbm [thread:$0]  (%p1645_p4), %s1846_s13, 128, %s1844_s22, %s1127_s24   ;;  %v1385_v50 = vpop.f32.mrb[11].mxu1 }
 0x644 PF: > { %p1404_p2 = scmp.ge.s32.totalorder %s1570_s20, 2  ;;  %s1153_s11 = sand.u32 1, %s1550_s15  }
 0x645   : > { %s1154_s12 = scalar_lea.sflag [#allocation7], %s1153_s11 }
 0x646   : > { %p1401_p3 = pnand %p1404_p2, %p1652_p8 }
 0x648   : > { %1545 = dma.done.wait (!%p1401_p3), %s1154_s12, 128  }
 0x649   : > { %1547 = vsyncadd (!%p1401_p3), %s1154_s12, 4294967168  ;;  %s17_s20 = sadd.s32 1, %s1570_s20   ;;  %s1898_s15 = smov %s1554_s16 }
 0x64a   : > { %p14_p5 = scmp.ge.s32.totalorder %s17_s20, 4   ;;  %s1899_s16 = smov %s1558_s17 }
 0x64b   : > { %s1900_s17 = smov %s1658_s28  ;;  %s1901_s18 = smov %s1566_s19 }
 0x64c   : > { %s1902_s19 = smov %s1904_s23  ;;  %16 = sbr.rel (!%p14_p5) target bundleno = 4 (0x4), region = 100 }
 0x653   :  { %1159 = vsyncpa [#allocation7], 1 }
 0x654   :  { %1161 = vsyncpa [#allocation7 + $0x1], 1 }

</bundles_post_ra>
